<compile_context>
chip_gen: v5e
topology: v5e:2x2
jax: 0.10.0
libtpu: 0.0.40
codegen_flags: <defaults>
</compile_context>

<pallas_src>
import jax
import jax.numpy as jnp
from jax.experimental import pallas as pl
from jax.experimental.pallas import tpu as pltpu

IN_FEATURES = 3 * 32 * 32   # 3072
HIDDEN = 128
OUT_FEATURES = 1

DEFAULT_TB = 1024                       # batch rows per grid step (multiple of 8)
VMEM_LIMIT_BYTES = 48 * 1024 * 1024     # safe on v5e/v6e (128 MiB) and v7x (64 MiB)


def _discriminator_kernel(x_ref, w1_ref, b1_ref, w2_ref, b2_ref, o_ref):
    # x_ref:  (TB, 3072)  f32 flattened image tile (no cast, straight from HBM)
    # w1_ref: (3072, 128) f32 first linear weight, (in, out) layout
    # b1_ref: (1, 128)    f32 first linear bias
    # w2_ref: (1, 128)    f32 second linear weight as a row vector
    # b2_ref: (1, 1)      f32 second linear bias
    # o_ref:  (TB, 1)     f32 discriminator scores
    x = x_ref[...]

    # Linear(3072 -> 128) on the MXU, f32 accumulation.  Compute is fully hidden
    # under the x DMA, so no bf16 narrowing is needed.
    h = jnp.dot(x, w1_ref[...], preferred_element_type=jnp.float32) + b1_ref[...]

    # LeakyReLU(0.2): one vmul + one vmax on the VPU.
    h = jnp.maximum(h, 0.2 * h)

    # Linear(128 -> 1) as a VPU/XLU lane reduction (cheaper than a 1-wide MXU matmul).
    logit = jnp.sum(h * w2_ref[...], axis=-1, keepdims=True) + b2_ref[...]

    # Sigmoid: exp / reciprocal ride the EUP slot.
    o_ref[...] = jax.nn.sigmoid(logit).astype(o_ref.dtype)


def _build_call(B, tb, grid, single_buffer_weights):
    def resident(shape):
        kwargs = {}
        if single_buffer_weights:
            # Fetched once (constant index_map) -> one buffer is enough; frees VMEM.
            kwargs["pipeline_mode"] = pl.Buffered(1)
        return pl.BlockSpec(shape, lambda i, _s=shape: (0,) * len(_s), **kwargs)

    cost = pl.CostEstimate(
        flops=2 * B * IN_FEATURES * HIDDEN + 4 * B * HIDDEN,
        transcendentals=B,
        bytes_accessed=(B * IN_FEATURES * 4            # x (f32, read once)
                        + IN_FEATURES * HIDDEN * 4     # w1 (f32)
                        + (2 * HIDDEN + 1) * 4         # b1, w2, b2
                        + B * OUT_FEATURES * 4),       # output
    )

    return pl.pallas_call(
        _discriminator_kernel,
        out_shape=jax.ShapeDtypeStruct((B, OUT_FEATURES), jnp.float32),
        grid=grid,
        in_specs=[
            pl.BlockSpec((tb, IN_FEATURES), lambda i: (i, 0)),  # x tile (double-buffered)
            resident((IN_FEATURES, HIDDEN)),                    # w1 (VMEM-resident)
            resident((1, HIDDEN)),                              # b1
            resident((1, HIDDEN)),                              # w2 row
            resident((1, 1)),                                   # b2
        ],
        out_specs=pl.BlockSpec((tb, OUT_FEATURES), lambda i: (i, 0)),
        compiler_params=pltpu.CompilerParams(
            dimension_semantics=("parallel",),
            vmem_limit_bytes=VMEM_LIMIT_BYTES,
        ),
        cost_estimate=cost,
    )


def discriminator_forward(x_nchw, params, *, tb=DEFAULT_TB):
    """x_nchw: (B, 3, 32, 32) -> (B, 1) float32 discriminator scores."""
    w1, b1, w2, b2 = params
    B = x_nchw.shape[0]

    # nn.Flatten(): row-major (C, H, W) -> 3072, identical order to PyTorch.
    # Layout-preserving reshape; no dtype cast, no padding copy.
    x_flat = x_nchw.reshape(B, IN_FEATURES).astype(jnp.float32)

    # Normalize parameter shapes to what the BlockSpecs expect.
    w1_f = w1.reshape(IN_FEATURES, HIDDEN).astype(jnp.float32)
    b1_row = b1.reshape(1, HIDDEN).astype(jnp.float32)
    w2_row = w2.reshape(1, HIDDEN).astype(jnp.float32)      # (128,1)/(128,) -> (1,128)
    b2_s = b2.reshape(1, OUT_FEATURES).astype(jnp.float32)

    # Small batches: a single block spanning the whole batch (block == full dim is
    # always legal).  Large batches: fixed TB (multiple of 8); the tail block may
    # read unspecified rows, but each row is computed independently and rows past
    # B are dropped by the masked output store -- never reduced over.
    tb = B if B <= tb else tb
    grid = (pl.cdiv(B, tb),)

    args = (x_flat, w1_f, b1_row, w2_row, b2_s)
    try:
        out = _build_call(B, tb, grid, single_buffer_weights=True)(*args)
    except Exception:
        # Fallback if this jax version rejects pl.Buffered(1) on an input spec.
        out = _build_call(B, tb, grid, single_buffer_weights=False)(*args)
    return out


def init_params(key):
    """Deterministic init mimicking PyTorch Linear default (U[-1/sqrt(fan_in), +1/sqrt(fan_in)])."""
    k1, k2, k3, k4 = jax.random.split(key, 4)
    bound1 = 1.0 / jnp.sqrt(jnp.float32(IN_FEATURES))
    bound2 = 1.0 / jnp.sqrt(jnp.float32(HIDDEN))
    # Stored as (in, out) so the kernel does x @ w directly.
    w1 = jax.random.uniform(k1, (IN_FEATURES, HIDDEN), jnp.float32, -bound1, bound1)
    b1 = jax.random.uniform(k2, (1, HIDDEN), jnp.float32, -bound1, bound1)
    w2 = jax.random.uniform(k3, (HIDDEN, OUT_FEATURES), jnp.float32, -bound2, bound2)
    b2 = jax.random.uniform(k4, (1, OUT_FEATURES), jnp.float32, -bound2, bound2)
    return w1, b1, w2, b2


def _reference_forward(x_nchw, params):
    """Pure-JAX f32 reference for a correctness sanity check."""
    w1, b1, w2, b2 = params
    x = x_nchw.reshape(x_nchw.shape[0], IN_FEATURES)
    h = x @ w1 + b1.reshape(1, HIDDEN)
    h = jnp.where(h > 0, h, 0.2 * h)
    return jax.nn.sigmoid(h @ w2.reshape(HIDDEN, OUT_FEATURES) + b2.reshape(1, OUT_FEATURES))


if __name__ == "__main__":
    key = jax.random.PRNGKey(0)
    key_x, key_p = jax.random.split(key)

    # Shapes implied by the module: (B, 3, 32, 32); small batch for the smoke test.
    x = jax.random.normal(key_x, (2, 3, 32, 32), dtype=jnp.float32)
    params = init_params(key_p)

    out = jax.block_until_ready(discriminator_forward(x, params))
    ref = _reference_forward(x, params)

    assert out.shape == (2, 1), out.shape
    assert jnp.allclose(out, ref, atol=1e-2, rtol=1e-2), (out, ref)

    print("KERNEL_OK")
</pallas_src>

<mosaic_0001>
module attributes {stable_mosaic.version = 11 : i64} {
  func.func @_discriminator_kernel(%arg0: i32, %arg1: memref<2x3072xf32, #tpu.memory_space<vmem>>, %arg2: memref<3072x128xf32, #tpu.memory_space<vmem>>, %arg3: memref<1x128xf32, #tpu.memory_space<vmem>>, %arg4: memref<1x128xf32, #tpu.memory_space<vmem>>, %arg5: memref<1x1xf32, #tpu.memory_space<vmem>>, %arg6: memref<2x1xf32, #tpu.memory_space<vmem>>) attributes {dimension_semantics = [#tpu.dimension_semantics<parallel>], iteration_bounds = array<i64: 1>, scalar_prefetch = 0 : i64, scratch_operands = 0 : i64, tpu.core_type = #tpu.core_type<tc>, window_params = [{transform_indices = @transform_0, window_bounds = array<i64: 2, 3072>}, {pipeline_mode = #tpu.pipeline_mode<synchronous>, transform_indices = @transform_1, window_bounds = array<i64: 3072, 128>}, {pipeline_mode = #tpu.pipeline_mode<synchronous>, transform_indices = @transform_2, window_bounds = array<i64: 1, 128>}, {pipeline_mode = #tpu.pipeline_mode<synchronous>, transform_indices = @transform_3, window_bounds = array<i64: 1, 128>}, {pipeline_mode = #tpu.pipeline_mode<synchronous>, transform_indices = @transform_4, window_bounds = array<i64: 1, 1>}, {transform_indices = @transform_5, window_bounds = array<i64: 2, 1>}]} {
    %c0 = arith.constant 0 : index
    %c0_0 = arith.constant 0 : index
    %0 = vector.load %arg1[%c0, %c0_0] : memref<2x3072xf32, #tpu.memory_space<vmem>>, vector<2x3072xf32>
    %c0_1 = arith.constant 0 : index
    %c0_2 = arith.constant 0 : index
    %1 = vector.load %arg2[%c0_1, %c0_2] : memref<3072x128xf32, #tpu.memory_space<vmem>>, vector<3072x128xf32>
    %cst = arith.constant dense<0.000000e+00> : vector<2x128xf32>
    %2 = tpu.matmul %0, %1, %cst {dimension_numbers = #tpu.dot_dimension_numbers<[1], [0], [0], [1], [0, 0, 1, 1], [], []>} : vector<2x3072xf32>, vector<3072x128xf32>, vector<2x128xf32> -> vector<2x128xf32>
    %c0_3 = arith.constant 0 : index
    %c0_4 = arith.constant 0 : index
    %3 = vector.load %arg3[%c0_3, %c0_4] : memref<1x128xf32, #tpu.memory_space<vmem>>, vector<1x128xf32>
    %4 = vector.broadcast %3 : vector<1x128xf32> to vector<2x128xf32>
    %5 = arith.addf %2, %4 : vector<2x128xf32>
    %cst_5 = arith.constant 2.000000e-01 : f32
    %6 = vector.broadcast %cst_5 : f32 to vector<2x128xf32>
    %7 = arith.mulf %6, %5 : vector<2x128xf32>
    %8 = arith.maximumf %5, %7 : vector<2x128xf32>
    %c0_6 = arith.constant 0 : index
    %c0_7 = arith.constant 0 : index
    %9 = vector.load %arg4[%c0_6, %c0_7] : memref<1x128xf32, #tpu.memory_space<vmem>>, vector<1x128xf32>
    %10 = vector.broadcast %9 : vector<1x128xf32> to vector<2x128xf32>
    %11 = arith.mulf %8, %10 : vector<2x128xf32>
    %cst_8 = arith.constant dense<0.000000e+00> : vector<2xf32>
    %12 = vector.multi_reduction <add>, %11, %cst_8 [1] : vector<2x128xf32> to vector<2xf32>
    %13 = vector.shape_cast %12 : vector<2xf32> to vector<2x1xf32>
    %c0_9 = arith.constant 0 : index
    %c0_10 = arith.constant 0 : index
    %14 = vector.load %arg5[%c0_9, %c0_10] : memref<1x1xf32, #tpu.memory_space<vmem>>, vector<1x1xf32>
    %15 = vector.broadcast %14 : vector<1x1xf32> to vector<2x1xf32>
    %16 = arith.addf %13, %15 : vector<2x1xf32>
    %17 = arith.negf %16 : vector<2x1xf32>
    %18 = math.exp %17 : vector<2x1xf32>
    %cst_11 = arith.constant 1.000000e+00 : f32
    %19 = vector.broadcast %cst_11 : f32 to vector<2x1xf32>
    %20 = arith.addf %19, %18 : vector<2x1xf32>
    %21 = arith.divf %19, %20 : vector<2x1xf32>
    %c0_12 = arith.constant 0 : index
    %c0_13 = arith.constant 0 : index
    %22 = vector.load %arg6[%c0_12, %c0_13] : memref<2x1xf32, #tpu.memory_space<vmem>>, vector<2x1xf32>
    tpu.vector_store %arg6[%c0_12, %c0_13], %21 {strides = array<i32>} : memref<2x1xf32, #tpu.memory_space<vmem>>, vector<2x1xf32>,
    return
  }
  func.func @transform_0(%arg0: i32) -> (i32, i32) {
    %c0_i32 = arith.constant 0 : i32
    %c0_i32_0 = arith.constant 0 : i32
    return %arg0, %c0_i32 : i32, i32
  }
  func.func @transform_1(%arg0: i32) -> (i32, i32) {
    %c0_i32 = arith.constant 0 : i32
    %c0_i32_0 = arith.constant 0 : i32
    %c0_i32_1 = arith.constant 0 : i32
    return %c0_i32, %c0_i32_0 : i32, i32
  }
  func.func @transform_2(%arg0: i32) -> (i32, i32) {
    %c0_i32 = arith.constant 0 : i32
    %c0_i32_0 = arith.constant 0 : i32
    %c0_i32_1 = arith.constant 0 : i32
    return %c0_i32, %c0_i32_0 : i32, i32
  }
  func.func @transform_3(%arg0: i32) -> (i32, i32) {
    %c0_i32 = arith.constant 0 : i32
    %c0_i32_0 = arith.constant 0 : i32
    %c0_i32_1 = arith.constant 0 : i32
    return %c0_i32, %c0_i32_0 : i32, i32
  }
  func.func @transform_4(%arg0: i32) -> (i32, i32) {
    %c0_i32 = arith.constant 0 : i32
    %c0_i32_0 = arith.constant 0 : i32
    %c0_i32_1 = arith.constant 0 : i32
    return %c0_i32, %c0_i32_0 : i32, i32
  }
  func.func @transform_5(%arg0: i32) -> (i32, i32) {
    %c0_i32 = arith.constant 0 : i32
    %c0_i32_0 = arith.constant 0 : i32
    return %arg0, %c0_i32 : i32, i32
  }
}

module attributes {stable_mosaic.version = 11 : i64} {
  func.func @_discriminator_kernel(%arg0: i32, %arg1: memref<2x3072xf32, #tpu.memory_space<vmem>>, %arg2: memref<3072x128xf32, #tpu.memory_space<vmem>>, %arg3: memref<1x128xf32, #tpu.memory_space<vmem>>, %arg4: memref<1x128xf32, #tpu.memory_space<vmem>>, %arg5: memref<1x1xf32, #tpu.memory_space<vmem>>, %arg6: memref<2x1xf32, #tpu.memory_space<vmem>>) attributes {dimension_semantics = [#tpu.dimension_semantics<parallel>], iteration_bounds = array<i64: 1>, scalar_prefetch = 0 : i64, scratch_operands = 0 : i64, tpu.core_type = #tpu.core_type<tc>, window_params = [{transform_indices = @transform_0, window_bounds = array<i64: 2, 3072>}, {pipeline_mode = #tpu.pipeline_mode<synchronous>, transform_indices = @transform_1, window_bounds = array<i64: 3072, 128>}, {pipeline_mode = #tpu.pipeline_mode<synchronous>, transform_indices = @transform_2, window_bounds = array<i64: 1, 128>}, {pipeline_mode = #tpu.pipeline_mode<synchronous>, transform_indices = @transform_3, window_bounds = array<i64: 1, 128>}, {pipeline_mode = #tpu.pipeline_mode<synchronous>, transform_indices = @transform_4, window_bounds = array<i64: 1, 1>}, {transform_indices = @transform_5, window_bounds = array<i64: 2, 1>}]} {
    %c0 = arith.constant 0 : index
    %c0_0 = arith.constant 0 : index
    %0 = vector.load %arg1[%c0, %c0_0] : memref<2x3072xf32, #tpu.memory_space<vmem>>, vector<2x3072xf32>
    %c0_1 = arith.constant 0 : index
    %c0_2 = arith.constant 0 : index
    %1 = vector.load %arg2[%c0_1, %c0_2] : memref<3072x128xf32, #tpu.memory_space<vmem>>, vector<3072x128xf32>
    %cst = arith.constant dense<0.000000e+00> : vector<2x128xf32>
    %2 = tpu.matmul %0, %1, %cst {dimension_numbers = #tpu.dot_dimension_numbers<[1], [0], [0], [1], [0, 0, 1, 1], [], []>} : vector<2x3072xf32>, vector<3072x128xf32>, vector<2x128xf32> -> vector<2x128xf32>
    %c0_3 = arith.constant 0 : index
    %c0_4 = arith.constant 0 : index
    %3 = vector.load %arg3[%c0_3, %c0_4] : memref<1x128xf32, #tpu.memory_space<vmem>>, vector<1x128xf32>
    %4 = vector.broadcast %3 : vector<1x128xf32> to vector<2x128xf32>
    %5 = arith.addf %2, %4 : vector<2x128xf32>
    %cst_5 = arith.constant 2.000000e-01 : f32
    %6 = vector.broadcast %cst_5 : f32 to vector<2x128xf32>
    %7 = arith.mulf %6, %5 : vector<2x128xf32>
    %8 = arith.maximumf %5, %7 : vector<2x128xf32>
    %c0_6 = arith.constant 0 : index
    %c0_7 = arith.constant 0 : index
    %9 = vector.load %arg4[%c0_6, %c0_7] : memref<1x128xf32, #tpu.memory_space<vmem>>, vector<1x128xf32>
    %10 = vector.broadcast %9 : vector<1x128xf32> to vector<2x128xf32>
    %11 = arith.mulf %8, %10 : vector<2x128xf32>
    %cst_8 = arith.constant dense<0.000000e+00> : vector<2xf32>
    %12 = vector.multi_reduction <add>, %11, %cst_8 [1] : vector<2x128xf32> to vector<2xf32>
    %13 = vector.shape_cast %12 : vector<2xf32> to vector<2x1xf32>
    %c0_9 = arith.constant 0 : index
    %c0_10 = arith.constant 0 : index
    %14 = vector.load %arg5[%c0_9, %c0_10] : memref<1x1xf32, #tpu.memory_space<vmem>>, vector<1x1xf32>
    %15 = vector.broadcast %14 : vector<1x1xf32> to vector<2x1xf32>
    %16 = arith.addf %13, %15 : vector<2x1xf32>
    %17 = arith.negf %16 : vector<2x1xf32>
    %18 = math.exp %17 : vector<2x1xf32>
    %cst_11 = arith.constant 1.000000e+00 : f32
    %19 = vector.broadcast %cst_11 : f32 to vector<2x1xf32>
    %20 = arith.addf %19, %18 : vector<2x1xf32>
    %21 = arith.divf %19, %20 : vector<2x1xf32>
    %c0_12 = arith.constant 0 : index
    %c0_13 = arith.constant 0 : index
    %22 = vector.load %arg6[%c0_12, %c0_13] : memref<2x1xf32, #tpu.memory_space<vmem>>, vector<2x1xf32>
    tpu.vector_store %arg6[%c0_12, %c0_13], %21 {strides = array<i32>} : memref<2x1xf32, #tpu.memory_space<vmem>>, vector<2x1xf32>,
    return
  }
  func.func @transform_0(%arg0: i32) -> (i32, i32) {
    %c0_i32 = arith.constant 0 : i32
    %c0_i32_0 = arith.constant 0 : i32
    return %arg0, %c0_i32 : i32, i32
  }
  func.func @transform_1(%arg0: i32) -> (i32, i32) {
    %c0_i32 = arith.constant 0 : i32
    %c0_i32_0 = arith.constant 0 : i32
    %c0_i32_1 = arith.constant 0 : i32
    return %c0_i32, %c0_i32_0 : i32, i32
  }
  func.func @transform_2(%arg0: i32) -> (i32, i32) {
    %c0_i32 = arith.constant 0 : i32
    %c0_i32_0 = arith.constant 0 : i32
    %c0_i32_1 = arith.constant 0 : i32
    return %c0_i32, %c0_i32_0 : i32, i32
  }
  func.func @transform_3(%arg0: i32) -> (i32, i32) {
    %c0_i32 = arith.constant 0 : i32
    %c0_i32_0 = arith.constant 0 : i32
    %c0_i32_1 = arith.constant 0 : i32
    return %c0_i32, %c0_i32_0 : i32, i32
  }
  func.func @transform_4(%arg0: i32) -> (i32, i32) {
    %c0_i32 = arith.constant 0 : i32
    %c0_i32_0 = arith.constant 0 : i32
    %c0_i32_1 = arith.constant 0 : i32
    return %c0_i32, %c0_i32_0 : i32, i32
  }
  func.func @transform_5(%arg0: i32) -> (i32, i32) {
    %c0_i32 = arith.constant 0 : i32
    %c0_i32_0 = arith.constant 0 : i32
    return %arg0, %c0_i32 : i32, i32
  }
}

</mosaic_0001>

<bundles_post_ra>
// kernel: tpu_custom_call.1
= control target key start
LH: loop header
LB: loop body
LE: loop exit
PB: predicated region body
PF: predicated region fallthrough
CT: control target
= control target key end

     0   :  { %s1270_s0 = inlined_call_operand.hbm [shape: f32[2,3072], index: 0, kind: input, shape index: {}]   ;;  %s1271_s1 = inlined_call_operand.hbm [shape: f32[3072,128], index: 1, kind: input, shape index: {}]   ;;  %s1272_s2 = inlined_call_operand.hbm [shape: f32[1,128], index: 2, kind: input, shape index: {}]   ;;  %s1273_s3 = inlined_call_operand.hbm [shape: f32[1,128], index: 3, kind: input, shape index: {}]   ;;  %s1274_s4 = inlined_call_operand.<no memory space> [shape: f32[1,1], index: 4, kind: input, shape index: {}]   ;;  %s1275_s5 = inlined_call_operand.vmem [shape: f32[2,1], index: 5, kind: output, shape index: {}]  }
   0x1   :  { %v10_v0 = vstv %s1274_s4 }
   0x2   :  { %11 = vst [vmem:[#allocation2] sm:$0x1] %v10_v0 }
   0x3   :  { %12 = vsyncpa [#allocation4], 0 }
   0x4   :  { %13 = vsyncpa [#allocation6], 0  ;;  %s30_s22 = sshll.u32 %s1271_s1, 4  ;;  %s31_s22 = int_to_ptr.hbm [resolvable:$true] %s30_s22 }
   0x5   :  { %14 = vsyncpa [#allocation9], 0  ;;  %s1174_s23 = smov [#allocation5]   ;;  %s20_s27 = sshll.u32 %s1270_s0, 4  ;;  %s21_s27 = int_to_ptr.hbm [resolvable:$true] %s20_s27 }
   0x6   :  { %s32_s24 = sshll.u32 %s1174_s23, 4  ;;  %s1175_s28 = smov 128   ;;  %s33_s24 = int_to_ptr.vmem [resolvable:$true] %s32_s24 }
   0x7   :  { %s1176_s29 = smov 8   ;;  %s1177_s4 = smov [#allocation3]  }
   0x8   :  { %38 = dma.hbm_to_vmem [thread:$0]  %s31_s22, 49152, %s33_s24, [#allocation6], %s1175_s28, %s1175_s28, %s1176_s29  }
   0x9   :  { %s22_s30 = sshll.u32 %s1177_s4, 4  ;;  %s44_s8 = sshll.u32 %s1272_s2, 4  ;;  %s23_s30 = int_to_ptr.vmem [resolvable:$true] %s22_s30  ;;  %s45_s8 = int_to_ptr.hbm [resolvable:$true] %s44_s8 }
   0xa   :  { %25 = dma.hbm_to_vmem [thread:$0]  %s21_s27, 768, %s23_s30, [#allocation4]  }
   0xb   :  { %s55_s10 = sshll.u32 %s1273_s3, 4  ;;  %s1178_s11 = smov [#allocation7]   ;;  %s56_s10 = int_to_ptr.hbm [resolvable:$true] %s55_s10 }
   0xc   :  { %s46_s12 = sshll.u32 %s1178_s11, 4  ;;  %s1179_s0 = smov [#allocation8]   ;;  %s47_s12 = int_to_ptr.vmem [resolvable:$true] %s46_s12 }
   0xd   :  { %49 = dma.hbm_to_vmem [thread:$0]  %s45_s8, 16, %s47_s12, [#allocation6]  }
   0xe   :  { %s57_s13 = sshll.u32 %s1179_s0, 4  ;;  %s58_s13 = int_to_ptr.vmem [resolvable:$true] %s57_s13 }
   0xf   :  { %60 = dma.hbm_to_vmem [thread:$0]  %s56_s10, 16, %s58_s13, [#allocation9]  }
  0x10   :  { %1168 = dma.done.wait [#allocation4], 768  }
  0x11   :  { %1169 = vsyncadd [#allocation4], 4294966528 }
  0x12   :  { %1170 = dma.done.wait [#allocation6], 49168  }
  0x13   :  { %1171 = vsyncadd [#allocation6], 4294918128 }
  0x14   :  { %1172 = dma.done.wait [#allocation9], 16  }
  0x15   :  { %1173 = vsyncadd [#allocation9], 4294967280  ;;  %v100_v1 = vld [vmem:[#allocation5 + $0x78] sm:$0xff]  ;;  %v99_v3 = vld [vmem:[#allocation5 + $0x70] sm:$0xff]  ;;  %vm1021_vm0 = vcmask 1041408   ;;  %vm1049_vm4 = vcmask 1024  }
  0x16   :  { %v132_v2 = vld [vmem:[#allocation5 + $0x178] sm:$0xff]  ;;  %534 = vmatpush.msra.mxu0 %v100_v1  ;;  %v131_v5 = vld [vmem:[#allocation5 + $0x170] sm:$0xff]  ;;  %v98_v7 = vld [vmem:[#allocation5 + $0x68] sm:$0xff] }
  0x17   :  { %574 = vmatpush.msra.mxu2 %v132_v2  ;;  %v116_v4 = vld [vmem:[#allocation5 + $0xf8] sm:$0xff]  ;;  %v115_v8 = vld [vmem:[#allocation5 + $0xf0] sm:$0xff]  ;;  %v130_v9 = vld [vmem:[#allocation5 + $0x168] sm:$0xff] }
  0x18   :  { %v148_v6 = vld [vmem:[#allocation5 + $0x1f8] sm:$0xff]  ;;  %554 = vmatpush.msra.mxu1 %v116_v4  ;;  %535 = vmatpush.msra.mxu0 %v99_v3  ;;  %v147_v10 = vld [vmem:[#allocation5 + $0x1f0] sm:$0xff]  ;;  %v114_v11 = vld [vmem:[#allocation5 + $0xe8] sm:$0xff] }
  0x19   :  { %594 = vmatpush.msra.mxu3 %v148_v6  ;;  %575 = vmatpush.msra.mxu2 %v131_v5  ;;  %v97_v12 = vld [vmem:[#allocation5 + $0x60] sm:$0xff]  ;;  %v146_v14 = vld [vmem:[#allocation5 + $0x1e8] sm:$0xff]  ;;  %v96_v17 = vld [vmem:[#allocation5 + $0x58] sm:$0xff] }
  0x1a   :  { %555 = vmatpush.msra.mxu1 %v115_v8  ;;  %v129_v13 = vld [vmem:[#allocation5 + $0x160] sm:$0xff]  ;;  %536 = vmatpush.msra.mxu0 %v98_v7  ;;  %v128_v18 = vld [vmem:[#allocation5 + $0x158] sm:$0xff]  ;;  %v95_v21 = vld [vmem:[#allocation5 + $0x50] sm:$0xff] }
  0x1b   :  { %595 = vmatpush.msra.mxu3 %v147_v10  ;;  %576 = vmatpush.msra.mxu2 %v130_v9  ;;  %v113_v15 = vld [vmem:[#allocation5 + $0xe0] sm:$0xff]  ;;  %v112_v19 = vld [vmem:[#allocation5 + $0xd8] sm:$0xff]  ;;  %v127_v22 = vld [vmem:[#allocation5 + $0x150] sm:$0xff] }
  0x1c   :  { %v145_v16 = vld [vmem:[#allocation5 + $0x1e0] sm:$0xff]  ;;  %556 = vmatpush.msra.mxu1 %v114_v11  ;;  %537 = vmatpush.msra.mxu0 %v97_v12  ;;  %v144_v20 = vld [vmem:[#allocation5 + $0x1d8] sm:$0xff]  ;;  %v111_v23 = vld [vmem:[#allocation5 + $0xd0] sm:$0xff] }
  0x1d   :  { %596 = vmatpush.msra.mxu3 %v146_v14  ;;  %577 = vmatpush.msra.mxu2 %v129_v13  ;;  %v143_v24 = vld [vmem:[#allocation5 + $0x1d0] sm:$0xff]  ;;  %v94_v25 = vld [vmem:[#allocation5 + $0x48] sm:$0xff]  ;;  %v93_v29 = vld [vmem:[#allocation5 + $0x40] sm:$0xff] }
  0x1e   :  { %557 = vmatpush.msra.mxu1 %v113_v15  ;;  %538 = vmatpush.msra.mxu0 %v96_v17  ;;  %v126_v26 = vld [vmem:[#allocation5 + $0x148] sm:$0xff]  ;;  %v125_v30 = vld [vmem:[#allocation5 + $0x140] sm:$0xff]  ;;  %v92_v33 = vld [vmem:[#allocation5 + $0x38] sm:$0xff] }
  0x1f   :  { %597 = vmatpush.msra.mxu3 %v145_v16  ;;  %578 = vmatpush.msra.mxu2 %v128_v18  ;;  %v110_v27 = vld [vmem:[#allocation5 + $0xc8] sm:$0xff]  ;;  %v109_v31 = vld [vmem:[#allocation5 + $0xc0] sm:$0xff]  ;;  %v124_v34 = vld [vmem:[#allocation5 + $0x138] sm:$0xff] }
  0x20   :  { %558 = vmatpush.msra.mxu1 %v112_v19  ;;  %539 = vmatpush.msra.mxu0 %v95_v21  ;;  %v142_v28 = vld [vmem:[#allocation5 + $0x1c8] sm:$0xff]  ;;  %v141_v32 = vld [vmem:[#allocation5 + $0x1c0] sm:$0xff]  ;;  %v108_v35 = vld [vmem:[#allocation5 + $0xb8] sm:$0xff] }
  0x21   :  { %598 = vmatpush.msra.mxu3 %v144_v20  ;;  %579 = vmatpush.msra.mxu2 %v127_v22  ;;  %v140_v36 = vld [vmem:[#allocation5 + $0x1b8] sm:$0xff]  ;;  %v91_v37 = vld [vmem:[#allocation5 + $0x30] sm:$0xff]  ;;  %v90_v41 = vld [vmem:[#allocation5 + $0x28] sm:$0xff] }
  0x22   :  { %559 = vmatpush.msra.mxu1 %v111_v23  ;;  %540 = vmatpush.msra.mxu0 %v94_v25  ;;  %v123_v38 = vld [vmem:[#allocation5 + $0x130] sm:$0xff]  ;;  %v122_v42 = vld [vmem:[#allocation5 + $0x128] sm:$0xff]  ;;  %v89_v45 = vld [vmem:[#allocation5 + $0x20] sm:$0xff] }
  0x23   :  { %599 = vmatpush.msra.mxu3 %v143_v24  ;;  %580 = vmatpush.msra.mxu2 %v126_v26  ;;  %v107_v39 = vld [vmem:[#allocation5 + $0xb0] sm:$0xff]  ;;  %v106_v43 = vld [vmem:[#allocation5 + $0xa8] sm:$0xff]  ;;  %v121_v46 = vld [vmem:[#allocation5 + $0x120] sm:$0xff] }
  0x24   :  { %560 = vmatpush.msra.mxu1 %v110_v27  ;;  %541 = vmatpush.msra.mxu0 %v93_v29  ;;  %v139_v40 = vld [vmem:[#allocation5 + $0x1b0] sm:$0xff]  ;;  %v138_v44 = vld [vmem:[#allocation5 + $0x1a8] sm:$0xff]  ;;  %v105_v47 = vld [vmem:[#allocation5 + $0xa0] sm:$0xff] }
  0x25   :  { %600 = vmatpush.msra.mxu3 %v142_v28  ;;  %581 = vmatpush.msra.mxu2 %v125_v30  ;;  %v137_v48 = vld [vmem:[#allocation5 + $0x1a0] sm:$0xff]  ;;  %v88_v49 = vld [vmem:[#allocation5 + $0x18] sm:$0xff]  ;;  %v87_v53 = vld [vmem:[#allocation5 + $0x10] sm:$0xff] }
  0x26   :  { %561 = vmatpush.msra.mxu1 %v109_v31  ;;  %542 = vmatpush.msra.mxu0 %v92_v33  ;;  %v120_v50 = vld [vmem:[#allocation5 + $0x118] sm:$0xff]  ;;  %v119_v54 = vld [vmem:[#allocation5 + $0x110] sm:$0xff]  ;;  %v86_v57 = vld [vmem:[#allocation5 + $0x8] sm:$0xff] }
  0x27   :  { %601 = vmatpush.msra.mxu3 %v141_v32  ;;  %582 = vmatpush.msra.mxu2 %v124_v34  ;;  %v104_v51 = vld [vmem:[#allocation5 + $0x98] sm:$0xff]  ;;  %v103_v55 = vld [vmem:[#allocation5 + $0x90] sm:$0xff]  ;;  %v118_v58 = vld [vmem:[#allocation5 + $0x108] sm:$0xff] }
  0x28   :  { %562 = vmatpush.msra.mxu1 %v108_v35  ;;  %543 = vmatpush.msra.mxu0 %v91_v37  ;;  %v136_v52 = vld [vmem:[#allocation5 + $0x198] sm:$0xff]  ;;  %v135_v56 = vld [vmem:[#allocation5 + $0x190] sm:$0xff]  ;;  %v102_v59 = vld [vmem:[#allocation5 + $0x88] sm:$0xff] }
  0x29   :  { %602 = vmatpush.msra.mxu3 %v140_v36  ;;  %583 = vmatpush.msra.mxu2 %v123_v38  ;;  %v134_v60 = vld [vmem:[#allocation5 + $0x188] sm:$0xff]  ;;  %v85_v61 = vld [vmem:[#allocation5] sm:$0xff]  ;;  %v164_v63 = vld [vmem:[#allocation5 + $0x278] sm:$0xff] }
  0x2a   :  { %563 = vmatpush.msra.mxu1 %v107_v39  ;;  %544 = vmatpush.msra.mxu0 %v90_v41  ;;  %v117_v62 = vld [vmem:[#allocation5 + $0x100] sm:$0xff]  ;;  %v196_v0 = vld [vmem:[#allocation5 + $0x378] sm:$0xff]  ;;  %v163_v3 = vld [vmem:[#allocation5 + $0x270] sm:$0xff] }
  0x2b   :  { %603 = vmatpush.msra.mxu3 %v139_v40  ;;  %584 = vmatpush.msra.mxu2 %v122_v42  ;;  %v101_v1 = vld [vmem:[#allocation5 + $0x80] sm:$0xff]  ;;  %v180_v4 = vld [vmem:[#allocation5 + $0x2f8] sm:$0xff]  ;;  %v195_v5 = vld [vmem:[#allocation5 + $0x370] sm:$0xff] }
  0x2c   :  { %564 = vmatpush.msra.mxu1 %v106_v43  ;;  %545 = vmatpush.msra.mxu0 %v89_v45  ;;  %v133_v2 = vld [vmem:[#allocation5 + $0x180] sm:$0xff]  ;;  %v212_v6 = vld [vmem:[#allocation5 + $0x3f8] sm:$0xff]  ;;  %v162_v7 = vld [vmem:[#allocation5 + $0x268] sm:$0xff] }
  0x2d   :  { %604 = vmatpush.msra.mxu3 %v138_v44  ;;  %585 = vmatpush.msra.mxu2 %v121_v46  ;;  %v179_v8 = vld [vmem:[#allocation5 + $0x2f0] sm:$0xff]  ;;  %v194_v9 = vld [vmem:[#allocation5 + $0x368] sm:$0xff]  ;;  %v161_v11 = vld [vmem:[#allocation5 + $0x260] sm:$0xff] }
  0x2e   :  { %565 = vmatpush.msra.mxu1 %v105_v47  ;;  %546 = vmatpush.msra.mxu0 %v88_v49  ;;  %v211_v10 = vld [vmem:[#allocation5 + $0x3f0] sm:$0xff]  ;;  %v178_v12 = vld [vmem:[#allocation5 + $0x2e8] sm:$0xff]  ;;  %v193_v13 = vld [vmem:[#allocation5 + $0x360] sm:$0xff] }
  0x2f   :  { %605 = vmatpush.msra.mxu3 %v137_v48  ;;  %586 = vmatpush.msra.mxu2 %v120_v50  ;;  %v210_v14 = vld [vmem:[#allocation5 + $0x3e8] sm:$0xff]  ;;  %v160_v15 = vld [vmem:[#allocation5 + $0x258] sm:$0xff]  ;;  %v177_v16 = vld [vmem:[#allocation5 + $0x2e0] sm:$0xff] }
  0x30   :  { %566 = vmatpush.msra.mxu1 %v104_v51  ;;  %547 = vmatpush.msra.mxu0 %v87_v53  ;;  %v192_v17 = vld [vmem:[#allocation5 + $0x358] sm:$0xff]  ;;  %v209_v18 = vld [vmem:[#allocation5 + $0x3e0] sm:$0xff]  ;;  %v159_v19 = vld [vmem:[#allocation5 + $0x250] sm:$0xff] }
  0x31   :  { %606 = vmatpush.msra.mxu3 %v136_v52  ;;  %587 = vmatpush.msra.mxu2 %v119_v54  ;;  %v176_v20 = vld [vmem:[#allocation5 + $0x2d8] sm:$0xff]  ;;  %v191_v21 = vld [vmem:[#allocation5 + $0x350] sm:$0xff]  ;;  %v158_v23 = vld [vmem:[#allocation5 + $0x248] sm:$0xff] }
  0x32   :  { %567 = vmatpush.msra.mxu1 %v103_v55  ;;  %548 = vmatpush.msra.mxu0 %v86_v57  ;;  %v208_v22 = vld [vmem:[#allocation5 + $0x3d8] sm:$0xff]  ;;  %v175_v24 = vld [vmem:[#allocation5 + $0x2d0] sm:$0xff]  ;;  %v190_v25 = vld [vmem:[#allocation5 + $0x348] sm:$0xff] }
  0x33   :  { %607 = vmatpush.msra.mxu3 %v135_v56  ;;  %588 = vmatpush.msra.mxu2 %v118_v58  ;;  %v207_v26 = vld [vmem:[#allocation5 + $0x3d0] sm:$0xff]  ;;  %v157_v28 = vld [vmem:[#allocation5 + $0x240] sm:$0xff]  ;;  %v174_v29 = vld [vmem:[#allocation5 + $0x2c8] sm:$0xff] }
  0x34   :  { %568 = vmatpush.msra.mxu1 %v102_v59  ;;  %549 = vmatpush.msra.mxu0 %v85_v61  ;;  %v79_v27 = vld [vmem:[#allocation3] sm:$0xff]  ;;  %v189_v30 = vld [vmem:[#allocation5 + $0x340] sm:$0xff]  ;;  %v206_v31 = vld [vmem:[#allocation5 + $0x3c8] sm:$0xff] }
  0x35   :  { %608 = vmatpush.msra.mxu3 %v134_v60  ;;  %589 = vmatpush.msra.mxu2 %v117_v62  ;;  %479 = vst [vmem:[#allocation1] ss:$4 sm:$0xff] %v79_v27  ;;  %v156_v32 = vld [vmem:[#allocation5 + $0x238] sm:$0xff]  ;;  %v173_v33 = vld [vmem:[#allocation5 + $0x2c0] sm:$0xff]  ;;  %v155_v36 = vld [vmem:[#allocation5 + $0x230] sm:$0xff] }
  0x36   :  { %614 = vmatpush.msrb.mxu0 %v164_v63  ;;  %569 = vmatpush.msra.mxu1 %v101_v1  ;;  %v188_v34 = vld [vmem:[#allocation5 + $0x338] sm:$0xff]  ;;  %v205_v35 = vld [vmem:[#allocation5 + $0x3c0] sm:$0xff]  ;;  %v187_v38 = vld [vmem:[#allocation5 + $0x330] sm:$0xff] }
  0x37   :  { %654 = vmatpush.msrb.mxu2 %v196_v0  ;;  %609 = vmatpush.msra.mxu3 %v133_v2  ;;  %v172_v37 = vld [vmem:[#allocation5 + $0x2b8] sm:$0xff]  ;;  %v154_v40 = vld [vmem:[#allocation5 + $0x228] sm:$0xff]  ;;  %v171_v41 = vld [vmem:[#allocation5 + $0x2b0] sm:$0xff] }
  0x38   :  { %615 = vmatpush.msrb.mxu0 %v163_v3  ;;  %634 = vmatpush.msrb.mxu1 %v180_v4  ;;  %v204_v39 = vld [vmem:[#allocation5 + $0x3b8] sm:$0xff]  ;;  %v186_v42 = vld [vmem:[#allocation5 + $0x328] sm:$0xff]  ;;  %v203_v43 = vld [vmem:[#allocation5 + $0x3b0] sm:$0xff] }
  0x39   :  { %655 = vmatpush.msrb.mxu2 %v195_v5  ;;  %674 = vmatpush.msrb.mxu3 %v212_v6  ;;  %v80_v44 = vld [vmem:[#allocation3 + $0x8] sm:$0xff]  ;;  %v153_v45 = vld [vmem:[#allocation5 + $0x220] sm:$0xff]  ;;  %v170_v46 = vld [vmem:[#allocation5 + $0x2a8] sm:$0xff] }
  0x3a   :  { %616 = vmatpush.msrb.mxu0 %v162_v7  ;;  %635 = vmatpush.msrb.mxu1 %v179_v8  ;;  %v81_v47 = vld [vmem:[#allocation3 + $0x10] sm:$0xff]  ;;  %481 = vst [vmem:[#allocation1 + $0x20] ss:$4 sm:$0xff] %v80_v44  ;;  %v202_v53 = vld [vmem:[#allocation5 + $0x3a8] sm:$0xff]  ;;  %v152_v54 = vld [vmem:[#allocation5 + $0x218] sm:$0xff] }
  0x3b   :  { %656 = vmatpush.msrb.mxu2 %v194_v9  ;;  %675 = vmatpush.msrb.mxu3 %v211_v10  ;;  %v185_v48 = vld [vmem:[#allocation5 + $0x320] sm:$0xff]  ;;  %v184_v56 = vld [vmem:[#allocation5 + $0x318] sm:$0xff]  ;;  %v151_v58 = vld [vmem:[#allocation5 + $0x210] sm:$0xff] }
  0x3c   :  { %617 = vmatpush.msrb.mxu0 %v161_v11  ;;  %636 = vmatpush.msrb.mxu1 %v178_v12  ;;  %v482_v49 = vld.sshfl [vmem:[#allocation1] sm:$0xff pattern:$0x73625140]  ;;  %v484_v50 = vld.sshfl [vmem:[#allocation1 + $0x10] sm:$0xff pattern:$0x73625140] }
  0x3d   :  { %657 = vmatpush.msrb.mxu2 %v193_v13  ;;  %676 = vmatpush.msrb.mxu3 %v210_v14  ;;  %v1225_v51 = vld.sshfl [vmem:[#allocation1 + $0x8] sm:$0xff pattern:$0x73625140]  ;;  %v1227_v52 = vld.sshfl [vmem:[#allocation1 + $0x18] sm:$0xff pattern:$0x73625140] }
  0x3e   :  { %618 = vmatpush.msrb.mxu0 %v160_v15  ;;  %637 = vmatpush.msrb.mxu1 %v177_v16  ;;  %v169_v55 = vld [vmem:[#allocation5 + $0x2a0] sm:$0xff]  ;;  %490 = vst [vmem:[#allocation1] ss:$4 sm:$0xff] %v81_v47  ;;  %v168_v59 = vld [vmem:[#allocation5 + $0x298] sm:$0xff]  ;;  %v183_v60 = vld [vmem:[#allocation5 + $0x310] sm:$0xff] }
  0x3f   :  { %658 = vmatpush.msrb.mxu2 %v192_v17  ;;  %677 = vmatpush.msrb.mxu3 %v209_v18  ;;  %v201_v57 = vld [vmem:[#allocation5 + $0x3a0] sm:$0xff]  ;;  %v200_v61 = vld [vmem:[#allocation5 + $0x398] sm:$0xff]  ;;  %v150_v62 = vld [vmem:[#allocation5 + $0x208] sm:$0xff] }
  0x40   :  { %619 = vmatpush.msrb.mxu0 %v159_v19  ;;  %638 = vmatpush.msrb.mxu1 %v176_v20  ;;  %v167_v63 = vld [vmem:[#allocation5 + $0x290] sm:$0xff]  ;;  %v82_v0 = vld [vmem:[#allocation3 + $0x18] sm:$0xff]  ;;  %v149_v7 = vld [vmem:[#allocation5 + $0x200] sm:$0xff] }
  0x41   :  { %659 = vmatpush.msrb.mxu2 %v191_v21  ;;  %678 = vmatpush.msrb.mxu3 %v208_v22  ;;  %v1229_v1 = vld.sshfl [vmem:[#allocation1 + $0x30] sm:$0xff pattern:$0x73625140]  ;;  %v1231_v2 = vld.sshfl [vmem:[#allocation1 + $0x20] sm:$0xff pattern:$0x73625140] }
  0x42   :  { %620 = vmatpush.msrb.mxu0 %v158_v23  ;;  %639 = vmatpush.msrb.mxu1 %v175_v24  ;;  %v1233_v3 = vld.sshfl [vmem:[#allocation1 + $0x38] sm:$0xff pattern:$0x73625140]  ;;  %v1235_v4 = vld.sshfl [vmem:[#allocation1 + $0x28] sm:$0xff pattern:$0x73625140] }
  0x43   :  { %660 = vmatpush.msrb.mxu2 %v190_v25  ;;  %679 = vmatpush.msrb.mxu3 %v207_v26  ;;  %v182_v5 = vld [vmem:[#allocation5 + $0x308] sm:$0xff]  ;;  %v199_v6 = vld [vmem:[#allocation5 + $0x390] sm:$0xff]  ;;  %491 = vst [vmem:[#allocation1 + $0x20] ss:$4 sm:$0xff] %v82_v0  ;;  %v181_v9 = vld [vmem:[#allocation5 + $0x300] sm:$0xff] }
  0x44   :  { %621 = vmatpush.msrb.mxu0 %v157_v28  ;;  %640 = vmatpush.msrb.mxu1 %v174_v29  ;;  %v166_v8 = vld [vmem:[#allocation5 + $0x288] sm:$0xff]  ;;  %v228_v11 = vld [vmem:[#allocation5 + $0x478] sm:$0xff]  ;;  %v165_v13 = vld [vmem:[#allocation5 + $0x280] sm:$0xff] }
  0x45   :  { %661 = vmatpush.msrb.mxu2 %v189_v30  ;;  %680 = vmatpush.msrb.mxu3 %v206_v31  ;;  %v198_v10 = vld [vmem:[#allocation5 + $0x388] sm:$0xff]  ;;  %v260_v12 = vld [vmem:[#allocation5 + $0x578] sm:$0xff]  ;;  %v197_v14 = vld [vmem:[#allocation5 + $0x380] sm:$0xff] }
  0x46   :  { %622 = vmatpush.msrb.mxu0 %v156_v32  ;;  %641 = vmatpush.msrb.mxu1 %v173_v33  ;;  %v227_v15 = vld [vmem:[#allocation5 + $0x470] sm:$0xff]  ;;  %v244_v16 = vld [vmem:[#allocation5 + $0x4f8] sm:$0xff]  ;;  %v226_v19 = vld [vmem:[#allocation5 + $0x468] sm:$0xff] }
  0x47   :  { %662 = vmatpush.msrb.mxu2 %v188_v34  ;;  %681 = vmatpush.msrb.mxu3 %v205_v35  ;;  %v259_v17 = vld [vmem:[#allocation5 + $0x570] sm:$0xff]  ;;  %v276_v18 = vld [vmem:[#allocation5 + $0x5f8] sm:$0xff]  ;;  %v258_v21 = vld [vmem:[#allocation5 + $0x568] sm:$0xff] }
  0x48   :  { %623 = vmatpush.msrb.mxu0 %v155_v36  ;;  %642 = vmatpush.msrb.mxu1 %v172_v37  ;;  %v243_v20 = vld [vmem:[#allocation5 + $0x4f0] sm:$0xff]  ;;  %v225_v23 = vld [vmem:[#allocation5 + $0x460] sm:$0xff]  ;;  %v242_v24 = vld [vmem:[#allocation5 + $0x4e8] sm:$0xff] }
  0x49   :  { %663 = vmatpush.msrb.mxu2 %v187_v38  ;;  %682 = vmatpush.msrb.mxu3 %v204_v39  ;;  %v275_v22 = vld [vmem:[#allocation5 + $0x5f0] sm:$0xff]  ;;  %v257_v25 = vld [vmem:[#allocation5 + $0x560] sm:$0xff]  ;;  %v274_v26 = vld [vmem:[#allocation5 + $0x5e8] sm:$0xff] }
  0x4a   :  { %624 = vmatpush.msrb.mxu0 %v154_v40  ;;  %643 = vmatpush.msrb.mxu1 %v171_v41  ;;  %v1239_v27 = vld.sshfl [vmem:[#allocation1] sm:$0xff pattern:$0x73625140]  ;;  %v1241_v28 = vld.sshfl [vmem:[#allocation1 + $0x10] sm:$0xff pattern:$0x73625140] }
  0x4b   :  { %664 = vmatpush.msrb.mxu2 %v186_v42  ;;  %683 = vmatpush.msrb.mxu3 %v203_v43  ;;  %v1243_v29 = vld.sshfl [vmem:[#allocation1 + $0x8] sm:$0xff pattern:$0x73625140]  ;;  %v224_v30 = vld [vmem:[#allocation5 + $0x458] sm:$0xff]  ;;  %v241_v33 = vld [vmem:[#allocation5 + $0x4e0] sm:$0xff] }
  0x4c   :  { %625 = vmatpush.msrb.mxu0 %v153_v45  ;;  %644 = vmatpush.msrb.mxu1 %v170_v46  ;;  %v83_v31 = vld [vmem:[#allocation3 + $0x20] sm:$0xff]  ;;  %v1245_v32 = vld.sshfl [vmem:[#allocation1 + $0x18] sm:$0xff pattern:$0x73625140]  ;;  %v222_v40 = vld [vmem:[#allocation5 + $0x448] sm:$0xff] }
  0x4d   :  { %665 = vmatpush.msrb.mxu2 %v185_v48  ;;  %684 = vmatpush.msrb.mxu3 %v202_v53  ;;  %v256_v34 = vld [vmem:[#allocation5 + $0x558] sm:$0xff]  ;;  %500 = vst [vmem:[#allocation1] ss:$4 sm:$0xff] %v83_v31  ;;  %v273_v35 = vld [vmem:[#allocation5 + $0x5e0] sm:$0xff]  ;;  %v223_v36 = vld [vmem:[#allocation5 + $0x450] sm:$0xff] }
  0x4e   :  { %626 = vmatpush.msrb.mxu0 %v152_v54  ;;  %645 = vmatpush.msrb.mxu1 %v169_v55  ;;  %v240_v37 = vld [vmem:[#allocation5 + $0x4d8] sm:$0xff]  ;;  %v255_v38 = vld [vmem:[#allocation5 + $0x550] sm:$0xff]  ;;  %v254_v42 = vld [vmem:[#allocation5 + $0x548] sm:$0xff] }
  0x4f   :  { %666 = vmatpush.msrb.mxu2 %v184_v56  ;;  %685 = vmatpush.msrb.mxu3 %v201_v57  ;;  %v272_v39 = vld [vmem:[#allocation5 + $0x5d8] sm:$0xff]  ;;  %v239_v41 = vld [vmem:[#allocation5 + $0x4d0] sm:$0xff]  ;;  %v221_v44 = vld [vmem:[#allocation5 + $0x440] sm:$0xff] }
  0x50   :  { %627 = vmatpush.msrb.mxu0 %v151_v58  ;;  %646 = vmatpush.msrb.mxu1 %v168_v59  ;;  %v271_v43 = vld [vmem:[#allocation5 + $0x5d0] sm:$0xff]  ;;  %v238_v45 = vld [vmem:[#allocation5 + $0x4c8] sm:$0xff]  ;;  %v253_v46 = vld [vmem:[#allocation5 + $0x540] sm:$0xff] }
  0x51   :  { %667 = vmatpush.msrb.mxu2 %v183_v60  ;;  %686 = vmatpush.msrb.mxu3 %v200_v61  ;;  %v270_v47 = vld [vmem:[#allocation5 + $0x5c8] sm:$0xff]  ;;  %v220_v48 = vld [vmem:[#allocation5 + $0x438] sm:$0xff]  ;;  %v251_v54 = vld [vmem:[#allocation5 + $0x530] sm:$0xff] }
  0x52   :  { %628 = vmatpush.msrb.mxu0 %v150_v62  ;;  %647 = vmatpush.msrb.mxu1 %v167_v63  ;;  %v236_v53 = vld [vmem:[#allocation5 + $0x4b8] sm:$0xff]  ;;  %v218_v56 = vld [vmem:[#allocation5 + $0x428] sm:$0xff]  ;;  %v235_v57 = vld [vmem:[#allocation5 + $0x4b0] sm:$0xff] }
  0x53   :  { %668 = vmatpush.msrb.mxu2 %v182_v5  ;;  %687 = vmatpush.msrb.mxu3 %v199_v6  ;;  %v268_v55 = vld [vmem:[#allocation5 + $0x5b8] sm:$0xff]  ;;  %v250_v58 = vld [vmem:[#allocation5 + $0x528] sm:$0xff]  ;;  %v267_v59 = vld [vmem:[#allocation5 + $0x5b0] sm:$0xff] }
  0x54   :  { %629 = vmatpush.msrb.mxu0 %v149_v7  ;;  %648 = vmatpush.msrb.mxu1 %v166_v8  ;;  %v217_v60 = vld [vmem:[#allocation5 + $0x420] sm:$0xff]  ;;  %v234_v61 = vld [vmem:[#allocation5 + $0x4a8] sm:$0xff]  ;;  %v216_v0 = vld [vmem:[#allocation5 + $0x418] sm:$0xff] }
  0x55   :  { %669 = vmatpush.msrb.mxu2 %v181_v9  ;;  %688 = vmatpush.msrb.mxu3 %v198_v10  ;;  %v249_v62 = vld [vmem:[#allocation5 + $0x520] sm:$0xff]  ;;  %v266_v63 = vld [vmem:[#allocation5 + $0x5a8] sm:$0xff]  ;;  %v232_v5 = vld [vmem:[#allocation5 + $0x498] sm:$0xff] }
  0x56   :  { %550 = vmatmul.f32.vlgmr.msra.gmra.mxu0 %v482_v49  ;;  %590 = vmatmul.f32.vlgmr.msra.gmra.mxu2 %v484_v50  ;;  %v237_v49 = vld [vmem:[#allocation5 + $0x4c0] sm:$0xff]  ;;  %v252_v50 = vld [vmem:[#allocation5 + $0x538] sm:$0xff]  ;;  %v247_v6 = vld [vmem:[#allocation5 + $0x510] sm:$0xff] }
  0x57   :  { %694 = vmatpush.msra.mxu0 %v228_v11  ;;  %734 = vmatpush.msra.mxu2 %v260_v12  ;;  %v264_v7 = vld [vmem:[#allocation5 + $0x598] sm:$0xff]  ;;  %v214_v8 = vld [vmem:[#allocation5 + $0x408] sm:$0xff]  ;;  %v231_v9 = vld [vmem:[#allocation5 + $0x490] sm:$0xff] }
  0x58   :  { %649 = vmatpush.msrb.mxu1 %v165_v13  ;;  %689 = vmatpush.msrb.mxu3 %v197_v14  ;;  %v246_v10 = vld [vmem:[#allocation5 + $0x508] sm:$0xff]  ;;  %v263_v11 = vld [vmem:[#allocation5 + $0x590] sm:$0xff]  ;;  %v213_v12 = vld [vmem:[#allocation5 + $0x400] sm:$0xff] }
  0x59   :  { %570 = vmatmul.f32.vlgmr.msra.gmra.mxu1 %v1225_v51  ;;  %610 = vmatmul.f32.vlgmr.msra.gmra.mxu3 %v1227_v52  ;;  %v269_v51 = vld [vmem:[#allocation5 + $0x5c0] sm:$0xff]  ;;  %v219_v52 = vld [vmem:[#allocation5 + $0x430] sm:$0xff]  ;;  %v230_v13 = vld [vmem:[#allocation5 + $0x488] sm:$0xff] }
  0x5a   :  { %695 = vmatpush.msra.mxu0 %v227_v15  ;;  %714 = vmatpush.msra.mxu1 %v244_v16  ;;  %v245_v14 = vld [vmem:[#allocation5 + $0x500] sm:$0xff]  ;;  %v262_v15 = vld [vmem:[#allocation5 + $0x588] sm:$0xff]  ;;  %v292_v16 = vld [vmem:[#allocation5 + $0x678] sm:$0xff] }
  0x5b   :  { %735 = vmatpush.msra.mxu2 %v259_v17  ;;  %754 = vmatpush.msra.mxu3 %v276_v18  ;;  %v324_v17 = vld [vmem:[#allocation5 + $0x778] sm:$0xff]  ;;  %v229_v18 = vld [vmem:[#allocation5 + $0x480] sm:$0xff] }
  0x5c   :  { %696 = vmatpush.msra.mxu0 %v226_v19  ;;  %715 = vmatpush.msra.mxu1 %v243_v20  ;;  %v261_v19 = vld [vmem:[#allocation5 + $0x580] sm:$0xff]  ;;  %v291_v20 = vld [vmem:[#allocation5 + $0x670] sm:$0xff] }
  0x5d   :  { %736 = vmatpush.msra.mxu2 %v258_v21  ;;  %755 = vmatpush.msra.mxu3 %v275_v22  ;;  %v308_v21 = vld [vmem:[#allocation5 + $0x6f8] sm:$0xff]  ;;  %v323_v22 = vld [vmem:[#allocation5 + $0x770] sm:$0xff]  ;;  %v289_v31 = vld [vmem:[#allocation5 + $0x660] sm:$0xff] }
  0x5e   :  { %697 = vmatpush.msra.mxu0 %v225_v23  ;;  %716 = vmatpush.msra.mxu1 %v242_v24  ;;  %v340_v23 = vld [vmem:[#allocation5 + $0x7f8] sm:$0xff]  ;;  %v290_v24 = vld [vmem:[#allocation5 + $0x668] sm:$0xff] }
  0x5f   :  { %737 = vmatpush.msra.mxu2 %v257_v25  ;;  %756 = vmatpush.msra.mxu3 %v274_v26  ;;  %v307_v25 = vld [vmem:[#allocation5 + $0x6f0] sm:$0xff]  ;;  %v322_v26 = vld [vmem:[#allocation5 + $0x768] sm:$0xff] }
  0x60   :  { %670 = vmatmul.f32.vlgmr.msrb.gmra.mxu2 %v1229_v1  ;;  %698 = vmatpush.msra.mxu0 %v224_v30  ;;  %v233_v1 = vld [vmem:[#allocation5 + $0x4a0] sm:$0xff]  ;;  %v339_v30 = vld [vmem:[#allocation5 + $0x7f0] sm:$0xff] }
  0x61   :  { %717 = vmatpush.msra.mxu1 %v241_v33  ;;  %738 = vmatpush.msra.mxu2 %v256_v34  ;;  %v1259_v33 = vld.sshfl [vmem:[#allocation1 + $0x28] sm:$0xff pattern:$0x73625140] }
  0x62   :  { %757 = vmatpush.msra.mxu3 %v273_v35  ;;  %630 = vmatmul.f32.vlgmr.msrb.gmra.mxu0 %v1231_v2  ;;  %v248_v2 = vld [vmem:[#allocation5 + $0x518] sm:$0xff]  ;;  %v306_v34 = vld [vmem:[#allocation5 + $0x6e8] sm:$0xff] }
  0x63   :  { %690 = vmatmul.f32.vlgmr.msrb.gmra.mxu3 %v1233_v3  ;;  %699 = vmatpush.msra.mxu0 %v223_v36  ;;  %v265_v3 = vld [vmem:[#allocation5 + $0x5a0] sm:$0xff]  ;;  %v84_v35 = vld [vmem:[#allocation3 + $0x28] sm:$0xff] }
  0x64   :  { %718 = vmatpush.msra.mxu1 %v240_v37  ;;  %739 = vmatpush.msra.mxu2 %v255_v38  ;;  %v1261_v36 = vld.sshfl [vmem:[#allocation1 + $0x38] sm:$0xff pattern:$0x73625140] }
  0x65   :  { %758 = vmatpush.msra.mxu3 %v272_v39  ;;  %650 = vmatmul.f32.vlgmr.msrb.gmra.mxu1 %v1235_v4  ;;  %v215_v4 = vld [vmem:[#allocation5 + $0x410] sm:$0xff]  ;;  %v288_v37 = vld [vmem:[#allocation5 + $0x658] sm:$0xff]  ;;  %v305_v38 = vld [vmem:[#allocation5 + $0x6e0] sm:$0xff] }
  0x66   :  { %700 = vmatpush.msra.mxu0 %v222_v40  ;;  %719 = vmatpush.msra.mxu1 %v239_v41  ;;  %v320_v39 = vld [vmem:[#allocation5 + $0x758] sm:$0xff]  ;;  %v337_v40 = vld [vmem:[#allocation5 + $0x7e0] sm:$0xff]  ;;  %v287_v41 = vld [vmem:[#allocation5 + $0x650] sm:$0xff] }
  0x67   :  { %740 = vmatpush.msra.mxu2 %v254_v42  ;;  %759 = vmatpush.msra.mxu3 %v271_v43  ;;  %v304_v42 = vld [vmem:[#allocation5 + $0x6d8] sm:$0xff]  ;;  %v319_v43 = vld [vmem:[#allocation5 + $0x750] sm:$0xff] }
  0x68   :  { %701 = vmatpush.msra.mxu0 %v221_v44  ;;  %720 = vmatpush.msra.mxu1 %v238_v45  ;;  %v336_v44 = vld [vmem:[#allocation5 + $0x7d8] sm:$0xff]  ;;  %v286_v45 = vld [vmem:[#allocation5 + $0x648] sm:$0xff] }
  0x69   :  { %741 = vmatpush.msra.mxu2 %v253_v46  ;;  %760 = vmatpush.msra.mxu3 %v270_v47  ;;  %v303_v46 = vld [vmem:[#allocation5 + $0x6d0] sm:$0xff]  ;;  %v318_v47 = vld [vmem:[#allocation5 + $0x748] sm:$0xff] }
  0x6a   :  { %702 = vmatpush.msra.mxu0 %v220_v48  ;;  %721 = vmatpush.msra.mxu1 %v237_v49  ;;  %v335_v48 = vld [vmem:[#allocation5 + $0x7d0] sm:$0xff]  ;;  %v285_v49 = vld [vmem:[#allocation5 + $0x640] sm:$0xff] }
  0x6b   :  { %742 = vmatpush.msra.mxu2 %v252_v50  ;;  %761 = vmatpush.msra.mxu3 %v269_v51  ;;  %v302_v50 = vld [vmem:[#allocation5 + $0x6c8] sm:$0xff]  ;;  %v317_v51 = vld [vmem:[#allocation5 + $0x740] sm:$0xff] }
  0x6c   :  { %703 = vmatpush.msra.mxu0 %v219_v52  ;;  %722 = vmatpush.msra.mxu1 %v236_v53  ;;  %v334_v52 = vld [vmem:[#allocation5 + $0x7c8] sm:$0xff]  ;;  %v284_v53 = vld [vmem:[#allocation5 + $0x638] sm:$0xff] }
  0x6d   :  { %743 = vmatpush.msra.mxu2 %v251_v54  ;;  %762 = vmatpush.msra.mxu3 %v268_v55  ;;  %v301_v54 = vld [vmem:[#allocation5 + $0x6c0] sm:$0xff]  ;;  %v316_v55 = vld [vmem:[#allocation5 + $0x738] sm:$0xff] }
  0x6e   :  { %704 = vmatpush.msra.mxu0 %v218_v56  ;;  %723 = vmatpush.msra.mxu1 %v235_v57  ;;  %v333_v56 = vld [vmem:[#allocation5 + $0x7c0] sm:$0xff]  ;;  %v283_v57 = vld [vmem:[#allocation5 + $0x630] sm:$0xff] }
  0x6f   :  { %744 = vmatpush.msra.mxu2 %v250_v58  ;;  %763 = vmatpush.msra.mxu3 %v267_v59  ;;  %v300_v58 = vld [vmem:[#allocation5 + $0x6b8] sm:$0xff]  ;;  %v315_v59 = vld [vmem:[#allocation5 + $0x730] sm:$0xff] }
  0x70   :  { %705 = vmatpush.msra.mxu0 %v217_v60  ;;  %724 = vmatpush.msra.mxu1 %v234_v61  ;;  %v332_v60 = vld [vmem:[#allocation5 + $0x7b8] sm:$0xff]  ;;  %v282_v61 = vld [vmem:[#allocation5 + $0x628] sm:$0xff] }
  0x71   :  { %745 = vmatpush.msra.mxu2 %v249_v62  ;;  %764 = vmatpush.msra.mxu3 %v266_v63  ;;  %v299_v62 = vld [vmem:[#allocation5 + $0x6b0] sm:$0xff]  ;;  %v314_v63 = vld [vmem:[#allocation5 + $0x728] sm:$0xff] }
  0x72   :  { %706 = vmatpush.msra.mxu0 %v216_v0  ;;  %725 = vmatpush.msra.mxu1 %v233_v1  ;;  %v331_v0 = vld [vmem:[#allocation5 + $0x7b0] sm:$0xff]  ;;  %v281_v1 = vld [vmem:[#allocation5 + $0x620] sm:$0xff] }
  0x73   :  { %746 = vmatpush.msra.mxu2 %v248_v2  ;;  %765 = vmatpush.msra.mxu3 %v265_v3  ;;  %v298_v2 = vld [vmem:[#allocation5 + $0x6a8] sm:$0xff]  ;;  %v313_v3 = vld [vmem:[#allocation5 + $0x720] sm:$0xff] }
  0x74   :  { %707 = vmatpush.msra.mxu0 %v215_v4  ;;  %726 = vmatpush.msra.mxu1 %v232_v5  ;;  %v330_v4 = vld [vmem:[#allocation5 + $0x7a8] sm:$0xff]  ;;  %v280_v5 = vld [vmem:[#allocation5 + $0x618] sm:$0xff] }
  0x75   :  { %747 = vmatpush.msra.mxu2 %v247_v6  ;;  %766 = vmatpush.msra.mxu3 %v264_v7  ;;  %v297_v6 = vld [vmem:[#allocation5 + $0x6a0] sm:$0xff]  ;;  %v312_v7 = vld [vmem:[#allocation5 + $0x718] sm:$0xff] }
  0x76   :  { %708 = vmatpush.msra.mxu0 %v214_v8  ;;  %727 = vmatpush.msra.mxu1 %v231_v9  ;;  %v329_v8 = vld [vmem:[#allocation5 + $0x7a0] sm:$0xff]  ;;  %v279_v9 = vld [vmem:[#allocation5 + $0x610] sm:$0xff] }
  0x77   :  { %748 = vmatpush.msra.mxu2 %v246_v10  ;;  %767 = vmatpush.msra.mxu3 %v263_v11  ;;  %v296_v10 = vld [vmem:[#allocation5 + $0x698] sm:$0xff]  ;;  %v311_v11 = vld [vmem:[#allocation5 + $0x710] sm:$0xff] }
  0x78   :  { %709 = vmatpush.msra.mxu0 %v213_v12  ;;  %728 = vmatpush.msra.mxu1 %v230_v13  ;;  %v328_v12 = vld [vmem:[#allocation5 + $0x798] sm:$0xff]  ;;  %v278_v13 = vld [vmem:[#allocation5 + $0x608] sm:$0xff] }
  0x79   :  { %749 = vmatpush.msra.mxu2 %v245_v14  ;;  %768 = vmatpush.msra.mxu3 %v262_v15  ;;  %v295_v14 = vld [vmem:[#allocation5 + $0x690] sm:$0xff]  ;;  %v310_v15 = vld [vmem:[#allocation5 + $0x708] sm:$0xff] }
  0x7a   :  { %710 = vmatmul.f32.vlgmr.msra.gmra.mxu0 %v1239_v27  ;;  %750 = vmatmul.f32.vlgmr.msra.gmra.mxu2 %v1241_v28  ;;  %v1255_v27 = vld.sshfl [vmem:[#allocation1 + $0x20] sm:$0xff pattern:$0x73625140]  ;;  %v1257_v28 = vld.sshfl [vmem:[#allocation1 + $0x30] sm:$0xff pattern:$0x73625140] }
  0x7b   :  { %774 = vmatpush.msrb.mxu0 %v292_v16  ;;  %814 = vmatpush.msrb.mxu2 %v324_v17  ;;  %501 = vst [vmem:[#allocation1 + $0x20] ss:$4 sm:$0xff] %v84_v35  ;;  %v327_v16 = vld [vmem:[#allocation5 + $0x790] sm:$0xff]  ;;  %v277_v17 = vld [vmem:[#allocation5 + $0x600] sm:$0xff] }
  0x7c   :  { %729 = vmatpush.msra.mxu1 %v229_v18  ;;  %769 = vmatpush.msra.mxu3 %v261_v19  ;;  %v294_v18 = vld [vmem:[#allocation5 + $0x688] sm:$0xff]  ;;  %v309_v19 = vld [vmem:[#allocation5 + $0x700] sm:$0xff]  ;;  %v371_v35 = vld [vmem:[#allocation5 + $0x8f0] sm:$0xff] }
  0x7d   :  { %730 = vmatmul.f32.vlgmr.msra.gmra.mxu1 %v1243_v29  ;;  %770 = vmatmul.f32.vlgmr.msra.gmra.mxu3 %v1245_v32  ;;  %v321_v29 = vld [vmem:[#allocation5 + $0x760] sm:$0xff]  ;;  %v338_v32 = vld [vmem:[#allocation5 + $0x7e8] sm:$0xff] }
  0x7e   :  { %775 = vmatpush.msrb.mxu0 %v291_v20  ;;  %794 = vmatpush.msrb.mxu1 %v308_v21  ;;  %v326_v20 = vld [vmem:[#allocation5 + $0x788] sm:$0xff]  ;;  %v356_v21 = vld [vmem:[#allocation5 + $0x878] sm:$0xff] }
  0x7f   :  { %815 = vmatpush.msrb.mxu2 %v323_v22  ;;  %834 = vmatpush.msrb.mxu3 %v340_v23  ;;  %v388_v22 = vld [vmem:[#allocation5 + $0x978] sm:$0xff]  ;;  %v293_v23 = vld [vmem:[#allocation5 + $0x680] sm:$0xff] }
  0x80   :  { %776 = vmatpush.msrb.mxu0 %v290_v24  ;;  %795 = vmatpush.msrb.mxu1 %v307_v25  ;;  %v325_v24 = vld [vmem:[#allocation5 + $0x780] sm:$0xff]  ;;  %v355_v25 = vld [vmem:[#allocation5 + $0x870] sm:$0xff] }
  0x81   :  { %816 = vmatpush.msrb.mxu2 %v322_v26  ;;  %835 = vmatpush.msrb.mxu3 %v339_v30  ;;  %v372_v26 = vld [vmem:[#allocation5 + $0x8f8] sm:$0xff]  ;;  %v387_v30 = vld [vmem:[#allocation5 + $0x970] sm:$0xff] }
  0x82   :  { %777 = vmatpush.msrb.mxu0 %v289_v31  ;;  %796 = vmatpush.msrb.mxu1 %v306_v34  ;;  %v404_v31 = vld [vmem:[#allocation5 + $0x9f8] sm:$0xff]  ;;  %v354_v34 = vld [vmem:[#allocation5 + $0x868] sm:$0xff] }
  0x83   :  { %817 = vmatpush.msrb.mxu2 %v321_v29  ;;  %836 = vmatpush.msrb.mxu3 %v338_v32  ;;  %v386_v29 = vld [vmem:[#allocation5 + $0x968] sm:$0xff] }
  0x84   :  { %778 = vmatpush.msrb.mxu0 %v288_v37  ;;  %797 = vmatpush.msrb.mxu1 %v305_v38  ;;  %v370_v32 = vld [vmem:[#allocation5 + $0x8e8] sm:$0xff]  ;;  %v385_v37 = vld [vmem:[#allocation5 + $0x960] sm:$0xff] }
  0x85   :  { %818 = vmatpush.msrb.mxu2 %v320_v39  ;;  %837 = vmatpush.msrb.mxu3 %v337_v40  ;;  %v402_v38 = vld [vmem:[#allocation5 + $0x9e8] sm:$0xff]  ;;  %v352_v39 = vld [vmem:[#allocation5 + $0x858] sm:$0xff]  ;;  %v401_v40 = vld [vmem:[#allocation5 + $0x9e0] sm:$0xff] }
  0x86   :  { %779 = vmatpush.msrb.mxu0 %v287_v41  ;;  %798 = vmatpush.msrb.mxu1 %v304_v42  ;;  %v351_v41 = vld [vmem:[#allocation5 + $0x850] sm:$0xff]  ;;  %v368_v42 = vld [vmem:[#allocation5 + $0x8d8] sm:$0xff] }
  0x87   :  { %819 = vmatpush.msrb.mxu2 %v319_v43  ;;  %838 = vmatpush.msrb.mxu3 %v336_v44  ;;  %v383_v43 = vld [vmem:[#allocation5 + $0x950] sm:$0xff]  ;;  %v400_v44 = vld [vmem:[#allocation5 + $0x9d8] sm:$0xff] }
  0x88   :  { %780 = vmatpush.msrb.mxu0 %v286_v45  ;;  %799 = vmatpush.msrb.mxu1 %v303_v46  ;;  %v350_v45 = vld [vmem:[#allocation5 + $0x848] sm:$0xff]  ;;  %v367_v46 = vld [vmem:[#allocation5 + $0x8d0] sm:$0xff] }
  0x89   :  { %820 = vmatpush.msrb.mxu2 %v318_v47  ;;  %839 = vmatpush.msrb.mxu3 %v335_v48  ;;  %v382_v47 = vld [vmem:[#allocation5 + $0x948] sm:$0xff]  ;;  %v399_v48 = vld [vmem:[#allocation5 + $0x9d0] sm:$0xff] }
  0x8a   :  { %781 = vmatpush.msrb.mxu0 %v285_v49  ;;  %800 = vmatpush.msrb.mxu1 %v302_v50  ;;  %v349_v49 = vld [vmem:[#allocation5 + $0x840] sm:$0xff]  ;;  %v366_v50 = vld [vmem:[#allocation5 + $0x8c8] sm:$0xff] }
  0x8b   :  { %821 = vmatpush.msrb.mxu2 %v317_v51  ;;  %840 = vmatpush.msrb.mxu3 %v334_v52  ;;  %v381_v51 = vld [vmem:[#allocation5 + $0x940] sm:$0xff]  ;;  %v398_v52 = vld [vmem:[#allocation5 + $0x9c8] sm:$0xff] }
  0x8c   :  { %782 = vmatpush.msrb.mxu0 %v284_v53  ;;  %801 = vmatpush.msrb.mxu1 %v301_v54  ;;  %v348_v53 = vld [vmem:[#allocation5 + $0x838] sm:$0xff]  ;;  %v365_v54 = vld [vmem:[#allocation5 + $0x8c0] sm:$0xff] }
  0x8d   :  { %822 = vmatpush.msrb.mxu2 %v316_v55  ;;  %841 = vmatpush.msrb.mxu3 %v333_v56  ;;  %v380_v55 = vld [vmem:[#allocation5 + $0x938] sm:$0xff]  ;;  %v397_v56 = vld [vmem:[#allocation5 + $0x9c0] sm:$0xff] }
  0x8e   :  { %783 = vmatpush.msrb.mxu0 %v283_v57  ;;  %802 = vmatpush.msrb.mxu1 %v300_v58  ;;  %v347_v57 = vld [vmem:[#allocation5 + $0x830] sm:$0xff]  ;;  %v364_v58 = vld [vmem:[#allocation5 + $0x8b8] sm:$0xff] }
  0x8f   :  { %823 = vmatpush.msrb.mxu2 %v315_v59  ;;  %842 = vmatpush.msrb.mxu3 %v332_v60  ;;  %v379_v59 = vld [vmem:[#allocation5 + $0x930] sm:$0xff]  ;;  %v396_v60 = vld [vmem:[#allocation5 + $0x9b8] sm:$0xff] }
  0x90   :  { %784 = vmatpush.msrb.mxu0 %v282_v61  ;;  %803 = vmatpush.msrb.mxu1 %v299_v62  ;;  %v346_v61 = vld [vmem:[#allocation5 + $0x828] sm:$0xff]  ;;  %v363_v62 = vld [vmem:[#allocation5 + $0x8b0] sm:$0xff] }
  0x91   :  { %824 = vmatpush.msrb.mxu2 %v314_v63  ;;  %843 = vmatpush.msrb.mxu3 %v331_v0  ;;  %v378_v63 = vld [vmem:[#allocation5 + $0x928] sm:$0xff]  ;;  %v395_v0 = vld [vmem:[#allocation5 + $0x9b0] sm:$0xff] }
  0x92   :  { %785 = vmatpush.msrb.mxu0 %v281_v1  ;;  %804 = vmatpush.msrb.mxu1 %v298_v2  ;;  %v345_v1 = vld [vmem:[#allocation5 + $0x820] sm:$0xff]  ;;  %v362_v2 = vld [vmem:[#allocation5 + $0x8a8] sm:$0xff] }
  0x93   :  { %825 = vmatpush.msrb.mxu2 %v313_v3  ;;  %844 = vmatpush.msrb.mxu3 %v330_v4  ;;  %v377_v3 = vld [vmem:[#allocation5 + $0x920] sm:$0xff]  ;;  %v394_v4 = vld [vmem:[#allocation5 + $0x9a8] sm:$0xff] }
  0x94   :  { %786 = vmatpush.msrb.mxu0 %v280_v5  ;;  %805 = vmatpush.msrb.mxu1 %v297_v6  ;;  %v344_v5 = vld [vmem:[#allocation5 + $0x818] sm:$0xff]  ;;  %v361_v6 = vld [vmem:[#allocation5 + $0x8a0] sm:$0xff] }
  0x95   :  { %826 = vmatpush.msrb.mxu2 %v312_v7  ;;  %845 = vmatpush.msrb.mxu3 %v329_v8  ;;  %v376_v7 = vld [vmem:[#allocation5 + $0x918] sm:$0xff]  ;;  %v393_v8 = vld [vmem:[#allocation5 + $0x9a0] sm:$0xff] }
  0x96   :  { %787 = vmatpush.msrb.mxu0 %v279_v9  ;;  %806 = vmatpush.msrb.mxu1 %v296_v10  ;;  %v343_v9 = vld [vmem:[#allocation5 + $0x810] sm:$0xff]  ;;  %v360_v10 = vld [vmem:[#allocation5 + $0x898] sm:$0xff] }
  0x97   :  { %827 = vmatpush.msrb.mxu2 %v311_v11  ;;  %846 = vmatpush.msrb.mxu3 %v328_v12  ;;  %v375_v11 = vld [vmem:[#allocation5 + $0x910] sm:$0xff]  ;;  %v392_v12 = vld [vmem:[#allocation5 + $0x998] sm:$0xff] }
  0x98   :  { %788 = vmatpush.msrb.mxu0 %v278_v13  ;;  %807 = vmatpush.msrb.mxu1 %v295_v14  ;;  %v342_v13 = vld [vmem:[#allocation5 + $0x808] sm:$0xff]  ;;  %v359_v14 = vld [vmem:[#allocation5 + $0x890] sm:$0xff] }
  0x99   :  { %828 = vmatpush.msrb.mxu2 %v310_v15  ;;  %847 = vmatpush.msrb.mxu3 %v327_v16  ;;  %v374_v15 = vld [vmem:[#allocation5 + $0x908] sm:$0xff]  ;;  %v391_v16 = vld [vmem:[#allocation5 + $0x990] sm:$0xff] }
  0x9a   :  { %789 = vmatpush.msrb.mxu0 %v277_v17  ;;  %808 = vmatpush.msrb.mxu1 %v294_v18  ;;  %v341_v17 = vld [vmem:[#allocation5 + $0x800] sm:$0xff]  ;;  %v358_v18 = vld [vmem:[#allocation5 + $0x888] sm:$0xff] }
  0x9b   :  { %829 = vmatpush.msrb.mxu2 %v309_v19  ;;  %848 = vmatpush.msrb.mxu3 %v326_v20  ;;  %v373_v19 = vld [vmem:[#allocation5 + $0x900] sm:$0xff]  ;;  %v390_v20 = vld [vmem:[#allocation5 + $0x988] sm:$0xff] }
  0x9c   :  { %790 = vmatmul.f32.vlgmr.msrb.gmra.mxu0 %v1255_v27  ;;  %830 = vmatmul.f32.vlgmr.msrb.gmra.mxu2 %v1257_v28  ;;  %v403_v27 = vld [vmem:[#allocation5 + $0x9f0] sm:$0xff]  ;;  %v353_v28 = vld [vmem:[#allocation5 + $0x860] sm:$0xff] }
  0x9d   :  { %854 = vmatpush.msra.mxu0 %v356_v21  ;;  %894 = vmatpush.msra.mxu2 %v388_v22  ;;  %v502_v21 = vld.sshfl [vmem:[#allocation1] sm:$0xff pattern:$0x73625140]  ;;  %v504_v22 = vld.sshfl [vmem:[#allocation1 + $0x10] sm:$0xff pattern:$0x73625140] }
  0x9e   :  { %809 = vmatpush.msrb.mxu1 %v293_v23  ;;  %849 = vmatpush.msrb.mxu3 %v325_v24  ;;  %v420_v23 = vld [vmem:[#allocation5 + $0xa78] sm:$0xff] }
  0x9f   :  { %810 = vmatmul.f32.vlgmr.msrb.gmra.mxu1 %v1259_v33  ;;  %850 = vmatmul.f32.vlgmr.msrb.gmra.mxu3 %v1261_v36  ;;  %v369_v33 = vld [vmem:[#allocation5 + $0x8e0] sm:$0xff]  ;;  %v384_v36 = vld [vmem:[#allocation5 + $0x958] sm:$0xff] }
  0xa0   :  { %855 = vmatpush.msra.mxu0 %v355_v25  ;;  %874 = vmatpush.msra.mxu1 %v372_v26  ;;  %v452_v24 = vld [vmem:[#allocation5 + $0xb78] sm:$0xff]  ;;  %v357_v25 = vld [vmem:[#allocation5 + $0x880] sm:$0xff] }
  0xa1   :  { %895 = vmatpush.msra.mxu2 %v387_v30  ;;  %914 = vmatpush.msra.mxu3 %v404_v31  ;;  %v389_v26 = vld [vmem:[#allocation5 + $0x980] sm:$0xff]  ;;  %v503_v30 = vld.sshfl [vmem:[#allocation1 + $0x8] sm:$0xff pattern:$0x73625140] }
  0xa2   :  { %856 = vmatpush.msra.mxu0 %v354_v34  ;;  %875 = vmatpush.msra.mxu1 %v371_v35  ;;  %v505_v31 = vld.sshfl [vmem:[#allocation1 + $0x18] sm:$0xff pattern:$0x73625140]  ;;  %v419_v34 = vld [vmem:[#allocation5 + $0xa70] sm:$0xff] }
  0xa3   :  { %896 = vmatpush.msra.mxu2 %v386_v29  ;;  %915 = vmatpush.msra.mxu3 %v403_v27  ;;  %v436_v35 = vld [vmem:[#allocation5 + $0xaf8] sm:$0xff]  ;;  %v451_v29 = vld [vmem:[#allocation5 + $0xb70] sm:$0xff] }
  0xa4   :  { %857 = vmatpush.msra.mxu0 %v353_v28  ;;  %876 = vmatpush.msra.mxu1 %v370_v32  ;;  %v468_v27 = vld [vmem:[#allocation5 + $0xbf8] sm:$0xff]  ;;  %v418_v28 = vld [vmem:[#allocation5 + $0xa68] sm:$0xff]  ;;  %v435_v32 = vld [vmem:[#allocation5 + $0xaf0] sm:$0xff] }
  0xa5   :  { %897 = vmatpush.msra.mxu2 %v385_v37  ;;  %916 = vmatpush.msra.mxu3 %v402_v38  ;;  %v450_v37 = vld [vmem:[#allocation5 + $0xb68] sm:$0xff]  ;;  %v467_v38 = vld [vmem:[#allocation5 + $0xbf0] sm:$0xff] }
  0xa6   :  { %858 = vmatpush.msra.mxu0 %v352_v39  ;;  %877 = vmatpush.msra.mxu1 %v369_v33  ;;  %v417_v39 = vld [vmem:[#allocation5 + $0xa60] sm:$0xff]  ;;  %v434_v33 = vld [vmem:[#allocation5 + $0xae8] sm:$0xff] }
  0xa7   :  { %898 = vmatpush.msra.mxu2 %v384_v36  ;;  %917 = vmatpush.msra.mxu3 %v401_v40  ;;  %v449_v36 = vld [vmem:[#allocation5 + $0xb60] sm:$0xff]  ;;  %v466_v40 = vld [vmem:[#allocation5 + $0xbe8] sm:$0xff] }
  0xa8   :  { %859 = vmatpush.msra.mxu0 %v351_v41  ;;  %878 = vmatpush.msra.mxu1 %v368_v42  ;;  %v416_v41 = vld [vmem:[#allocation5 + $0xa58] sm:$0xff]  ;;  %v433_v42 = vld [vmem:[#allocation5 + $0xae0] sm:$0xff] }
  0xa9   :  { %899 = vmatpush.msra.mxu2 %v383_v43  ;;  %918 = vmatpush.msra.mxu3 %v400_v44  ;;  %v448_v43 = vld [vmem:[#allocation5 + $0xb58] sm:$0xff]  ;;  %v465_v44 = vld [vmem:[#allocation5 + $0xbe0] sm:$0xff] }
  0xaa   :  { %860 = vmatpush.msra.mxu0 %v350_v45  ;;  %879 = vmatpush.msra.mxu1 %v367_v46  ;;  %v415_v45 = vld [vmem:[#allocation5 + $0xa50] sm:$0xff]  ;;  %v432_v46 = vld [vmem:[#allocation5 + $0xad8] sm:$0xff] }
  0xab   :  { %900 = vmatpush.msra.mxu2 %v382_v47  ;;  %919 = vmatpush.msra.mxu3 %v399_v48  ;;  %v447_v47 = vld [vmem:[#allocation5 + $0xb50] sm:$0xff]  ;;  %v464_v48 = vld [vmem:[#allocation5 + $0xbd8] sm:$0xff] }
  0xac   :  { %861 = vmatpush.msra.mxu0 %v349_v49  ;;  %880 = vmatpush.msra.mxu1 %v366_v50  ;;  %v414_v49 = vld [vmem:[#allocation5 + $0xa48] sm:$0xff]  ;;  %v431_v50 = vld [vmem:[#allocation5 + $0xad0] sm:$0xff] }
  0xad   :  { %901 = vmatpush.msra.mxu2 %v381_v51  ;;  %920 = vmatpush.msra.mxu3 %v398_v52  ;;  %v446_v51 = vld [vmem:[#allocation5 + $0xb48] sm:$0xff]  ;;  %v463_v52 = vld [vmem:[#allocation5 + $0xbd0] sm:$0xff] }
  0xae   :  { %862 = vmatpush.msra.mxu0 %v348_v53  ;;  %881 = vmatpush.msra.mxu1 %v365_v54  ;;  %v413_v53 = vld [vmem:[#allocation5 + $0xa40] sm:$0xff]  ;;  %v430_v54 = vld [vmem:[#allocation5 + $0xac8] sm:$0xff] }
  0xaf   :  { %902 = vmatpush.msra.mxu2 %v380_v55  ;;  %921 = vmatpush.msra.mxu3 %v397_v56  ;;  %v445_v55 = vld [vmem:[#allocation5 + $0xb40] sm:$0xff]  ;;  %v462_v56 = vld [vmem:[#allocation5 + $0xbc8] sm:$0xff] }
  0xb0   :  { %863 = vmatpush.msra.mxu0 %v347_v57  ;;  %882 = vmatpush.msra.mxu1 %v364_v58  ;;  %v412_v57 = vld [vmem:[#allocation5 + $0xa38] sm:$0xff]  ;;  %v429_v58 = vld [vmem:[#allocation5 + $0xac0] sm:$0xff] }
  0xb1   :  { %903 = vmatpush.msra.mxu2 %v379_v59  ;;  %922 = vmatpush.msra.mxu3 %v396_v60  ;;  %v444_v59 = vld [vmem:[#allocation5 + $0xb38] sm:$0xff]  ;;  %v461_v60 = vld [vmem:[#allocation5 + $0xbc0] sm:$0xff] }
  0xb2   :  { %864 = vmatpush.msra.mxu0 %v346_v61  ;;  %883 = vmatpush.msra.mxu1 %v363_v62  ;;  %v411_v61 = vld [vmem:[#allocation5 + $0xa30] sm:$0xff]  ;;  %v428_v62 = vld [vmem:[#allocation5 + $0xab8] sm:$0xff] }
  0xb3   :  { %904 = vmatpush.msra.mxu2 %v378_v63  ;;  %923 = vmatpush.msra.mxu3 %v395_v0  ;;  %v443_v63 = vld [vmem:[#allocation5 + $0xb30] sm:$0xff]  ;;  %v460_v0 = vld [vmem:[#allocation5 + $0xbb8] sm:$0xff] }
  0xb4   :  { %865 = vmatpush.msra.mxu0 %v345_v1  ;;  %884 = vmatpush.msra.mxu1 %v362_v2  ;;  %v410_v1 = vld [vmem:[#allocation5 + $0xa28] sm:$0xff]  ;;  %v427_v2 = vld [vmem:[#allocation5 + $0xab0] sm:$0xff] }
  0xb5   :  { %905 = vmatpush.msra.mxu2 %v377_v3  ;;  %924 = vmatpush.msra.mxu3 %v394_v4  ;;  %v442_v3 = vld [vmem:[#allocation5 + $0xb28] sm:$0xff]  ;;  %v459_v4 = vld [vmem:[#allocation5 + $0xbb0] sm:$0xff] }
  0xb6   :  { %866 = vmatpush.msra.mxu0 %v344_v5  ;;  %885 = vmatpush.msra.mxu1 %v361_v6  ;;  %v409_v5 = vld [vmem:[#allocation5 + $0xa20] sm:$0xff]  ;;  %v426_v6 = vld [vmem:[#allocation5 + $0xaa8] sm:$0xff] }
  0xb7   :  { %906 = vmatpush.msra.mxu2 %v376_v7  ;;  %925 = vmatpush.msra.mxu3 %v393_v8  ;;  %v441_v7 = vld [vmem:[#allocation5 + $0xb20] sm:$0xff]  ;;  %v458_v8 = vld [vmem:[#allocation5 + $0xba8] sm:$0xff] }
  0xb8   :  { %867 = vmatpush.msra.mxu0 %v343_v9  ;;  %886 = vmatpush.msra.mxu1 %v360_v10  ;;  %v408_v9 = vld [vmem:[#allocation5 + $0xa18] sm:$0xff]  ;;  %v425_v10 = vld [vmem:[#allocation5 + $0xaa0] sm:$0xff] }
  0xb9   :  { %907 = vmatpush.msra.mxu2 %v375_v11  ;;  %926 = vmatpush.msra.mxu3 %v392_v12  ;;  %v440_v11 = vld [vmem:[#allocation5 + $0xb18] sm:$0xff]  ;;  %v457_v12 = vld [vmem:[#allocation5 + $0xba0] sm:$0xff] }
  0xba   :  { %868 = vmatpush.msra.mxu0 %v342_v13  ;;  %887 = vmatpush.msra.mxu1 %v359_v14  ;;  %v407_v13 = vld [vmem:[#allocation5 + $0xa10] sm:$0xff]  ;;  %v424_v14 = vld [vmem:[#allocation5 + $0xa98] sm:$0xff] }
  0xbb   :  { %908 = vmatpush.msra.mxu2 %v374_v15  ;;  %927 = vmatpush.msra.mxu3 %v391_v16  ;;  %v439_v15 = vld [vmem:[#allocation5 + $0xb10] sm:$0xff]  ;;  %v456_v16 = vld [vmem:[#allocation5 + $0xb98] sm:$0xff] }
  0xbc   :  { %869 = vmatpush.msra.mxu0 %v341_v17  ;;  %888 = vmatpush.msra.mxu1 %v358_v18  ;;  %v406_v17 = vld [vmem:[#allocation5 + $0xa08] sm:$0xff]  ;;  %v423_v18 = vld [vmem:[#allocation5 + $0xa90] sm:$0xff] }
  0xbd   :  { %909 = vmatpush.msra.mxu2 %v373_v19  ;;  %928 = vmatpush.msra.mxu3 %v390_v20  ;;  %v438_v19 = vld [vmem:[#allocation5 + $0xb08] sm:$0xff]  ;;  %v455_v20 = vld [vmem:[#allocation5 + $0xb90] sm:$0xff] }
  0xbe   :  { %870 = vmatmul.f32.vlgmr.msra.gmra.mxu0 %v502_v21  ;;  %910 = vmatmul.f32.vlgmr.msra.gmra.mxu2 %v504_v22  ;;  %v405_v21 = vld [vmem:[#allocation5 + $0xa00] sm:$0xff]  ;;  %v422_v22 = vld [vmem:[#allocation5 + $0xa88] sm:$0xff] }
  0xbf   :  { %934 = vmatpush.msrb.mxu0 %v420_v23  ;;  %974 = vmatpush.msrb.mxu2 %v452_v24  ;;  %v437_v23 = vld [vmem:[#allocation5 + $0xb00] sm:$0xff]  ;;  %v454_v24 = vld [vmem:[#allocation5 + $0xb88] sm:$0xff] }
  0xc0   :  { %889 = vmatpush.msra.mxu1 %v357_v25  ;;  %929 = vmatpush.msra.mxu3 %v389_v26  ;;  %v506_v25 = vld.sshfl [vmem:[#allocation1 + $0x20] sm:$0xff pattern:$0x73625140]  ;;  %v508_v26 = vld.sshfl [vmem:[#allocation1 + $0x30] sm:$0xff pattern:$0x73625140] }
  0xc1   :  { %890 = vmatmul.f32.vlgmr.msra.gmra.mxu1 %v503_v30  ;;  %930 = vmatmul.f32.vlgmr.msra.gmra.mxu3 %v505_v31  ;;  %v421_v30 = vld [vmem:[#allocation5 + $0xa80] sm:$0xff] }
  0xc2   :  { %935 = vmatpush.msrb.mxu0 %v419_v34  ;;  %954 = vmatpush.msrb.mxu1 %v436_v35  ;;  %v453_v31 = vld [vmem:[#allocation5 + $0xb80] sm:$0xff]  ;;  %v507_v34 = vld.sshfl [vmem:[#allocation1 + $0x28] sm:$0xff pattern:$0x73625140] }
  0xc3   :  { %975 = vmatpush.msrb.mxu2 %v451_v29  ;;  %994 = vmatpush.msrb.mxu3 %v468_v27  ;;  %v509_v35 = vld.sshfl [vmem:[#allocation1 + $0x38] sm:$0xff pattern:$0x73625140] }
  0xc4   :  { %936 = vmatpush.msrb.mxu0 %v418_v28  ;;  %955 = vmatpush.msrb.mxu1 %v435_v32  ;;  %v1065_v29 = vld [vmem:[#allocation7] ss:$0 sm:$0xff] }
  0xc5   :  { %976 = vmatpush.msrb.mxu2 %v450_v37  ;;  %995 = vmatpush.msrb.mxu3 %v467_v38 }
  0xc6   :  { %937 = vmatpush.msrb.mxu0 %v417_v39  ;;  %956 = vmatpush.msrb.mxu1 %v434_v33 }
  0xc7   :  { %977 = vmatpush.msrb.mxu2 %v449_v36  ;;  %996 = vmatpush.msrb.mxu3 %v466_v40 }
  0xc8   :  { %938 = vmatpush.msrb.mxu0 %v416_v41  ;;  %957 = vmatpush.msrb.mxu1 %v433_v42 }
  0xc9   :  { %978 = vmatpush.msrb.mxu2 %v448_v43  ;;  %997 = vmatpush.msrb.mxu3 %v465_v44 }
  0xca   :  { %939 = vmatpush.msrb.mxu0 %v415_v45  ;;  %958 = vmatpush.msrb.mxu1 %v432_v46 }
  0xcb   :  { %979 = vmatpush.msrb.mxu2 %v447_v47  ;;  %998 = vmatpush.msrb.mxu3 %v464_v48 }
  0xcc   :  { %940 = vmatpush.msrb.mxu0 %v414_v49  ;;  %959 = vmatpush.msrb.mxu1 %v431_v50 }
  0xcd   :  { %980 = vmatpush.msrb.mxu2 %v446_v51  ;;  %999 = vmatpush.msrb.mxu3 %v463_v52 }
  0xce   :  { %941 = vmatpush.msrb.mxu0 %v413_v53  ;;  %960 = vmatpush.msrb.mxu1 %v430_v54 }
  0xcf   :  { %981 = vmatpush.msrb.mxu2 %v445_v55  ;;  %1000 = vmatpush.msrb.mxu3 %v462_v56 }
  0xd0   :  { %942 = vmatpush.msrb.mxu0 %v412_v57  ;;  %961 = vmatpush.msrb.mxu1 %v429_v58 }
  0xd1   :  { %982 = vmatpush.msrb.mxu2 %v444_v59  ;;  %1001 = vmatpush.msrb.mxu3 %v461_v60 }
  0xd2   :  { %943 = vmatpush.msrb.mxu0 %v411_v61  ;;  %962 = vmatpush.msrb.mxu1 %v428_v62 }
  0xd3   :  { %983 = vmatpush.msrb.mxu2 %v443_v63  ;;  %1002 = vmatpush.msrb.mxu3 %v460_v0  ;;  %v551_v27 = vpop.f32.mrf.mxu0 }
  0xd4   :  { %944 = vmatpush.msrb.mxu0 %v410_v1  ;;  %963 = vmatpush.msrb.mxu1 %v427_v2  ;;  %v552_v28 = vadd.f32 %v1065_v29, %v551_v27 }
  0xd5   :  { %984 = vmatpush.msrb.mxu2 %v442_v3  ;;  %1003 = vmatpush.msrb.mxu3 %v459_v4 }
  0xd6   :  { %945 = vmatpush.msrb.mxu0 %v409_v5  ;;  %964 = vmatpush.msrb.mxu1 %v426_v6  ;;  %v571_v32 = vpop.f32.mrf.mxu1 }
  0xd7   :  { %985 = vmatpush.msrb.mxu2 %v441_v7  ;;  %1004 = vmatpush.msrb.mxu3 %v458_v8  ;;  %v572_v37 = vadd.f32 %v571_v32, %v552_v28 }
  0xd8   :  { %946 = vmatpush.msrb.mxu0 %v408_v9  ;;  %965 = vmatpush.msrb.mxu1 %v425_v10 }
  0xd9   :  { %986 = vmatpush.msrb.mxu2 %v440_v11  ;;  %1005 = vmatpush.msrb.mxu3 %v457_v12  ;;  %v591_v38 = vpop.f32.mrf.mxu2 }
  0xda   :  { %947 = vmatpush.msrb.mxu0 %v407_v13  ;;  %966 = vmatpush.msrb.mxu1 %v424_v14  ;;  %v592_v39 = vadd.f32 %v591_v38, %v572_v37 }
  0xdb   :  { %987 = vmatpush.msrb.mxu2 %v439_v15  ;;  %1006 = vmatpush.msrb.mxu3 %v456_v16 }
  0xdc   :  { %948 = vmatpush.msrb.mxu0 %v406_v17  ;;  %967 = vmatpush.msrb.mxu1 %v423_v18  ;;  %v611_v33 = vpop.f32.mrf.mxu3  ;;  %v1066_v17 = vld [vmem:[#allocation8] ss:$0 sm:$0xff] }
  0xdd   :  { %988 = vmatpush.msrb.mxu2 %v438_v19  ;;  %1007 = vmatpush.msrb.mxu3 %v455_v20  ;;  %v612_v36 = vadd.f32 %v611_v33, %v592_v39 }
  0xde   :  { %949 = vmatpush.msrb.mxu0 %v405_v21  ;;  %968 = vmatpush.msrb.mxu1 %v422_v22  ;;  %v1067_v21 = vld [vmem:[#allocation2] ss:$0 sm:$0xff] }
  0xdf   :  { %989 = vmatpush.msrb.mxu2 %v437_v23  ;;  %1008 = vmatpush.msrb.mxu3 %v454_v24  ;;  %v631_v40 = vpop.f32.mrf.mxu0 }
  0xe0   :  { %950 = vmatmul.f32.vlgmr.msrb.gmra.mxu0 %v506_v25  ;;  %990 = vmatmul.f32.vlgmr.msrb.gmra.mxu2 %v508_v26  ;;  %v632_v41 = vadd.f32 %v631_v40, %v612_v36 }
  0xe1   :  { %969 = vmatpush.msrb.mxu1 %v421_v30  ;;  %1009 = vmatpush.msrb.mxu3 %v453_v31 }
  0xe2   :  { %970 = vmatmul.f32.vlgmr.msrb.gmra.mxu1 %v507_v34  ;;  %1010 = vmatmul.f32.vlgmr.msrb.gmra.mxu3 %v509_v35  ;;  %v651_v42 = vpop.f32.mrf.mxu1 }
  0xe3   :  { %v652_v43 = vadd.f32 %v651_v42, %v632_v41  ;;  %v671_v44 = vpop.f32.mrf.mxu2 }
  0xe5   :  { %v672_v45 = vadd.f32 %v671_v44, %v652_v43 }
  0xe6   :  { %v691_v46 = vpop.f32.mrf.mxu3 }
  0xe7   :  { %v692_v48 = vadd.f32 %v691_v46, %v672_v45 }
  0xf7   :  { %v711_v47 = vpop.f32.mrf.mxu0 }
  0xf8   :  { %v712_v49 = vadd.f32 %v711_v47, %v692_v48 }
  0xfa   :  { %v731_v50 = vpop.f32.mrf.mxu1 }
  0xfb   :  { %v732_v52 = vadd.f32 %v731_v50, %v712_v49 }
  0xfd   :  { %v751_v51 = vpop.f32.mrf.mxu2 }
  0xfe   :  { %v752_v53 = vadd.f32 %v751_v51, %v732_v52 }
 0x100   :  { %v771_v54 = vpop.f32.mrf.mxu3 }
 0x101   :  { %v772_v56 = vadd.f32 %v771_v54, %v752_v53 }
 0x119   :  { %v791_v55 = vpop.f32.mrf.mxu0 }
 0x11a   :  { %v792_v57 = vadd.f32 %v791_v55, %v772_v56 }
 0x11c   :  { %v811_v58 = vpop.f32.mrf.mxu1 }
 0x11d   :  { %v812_v60 = vadd.f32 %v811_v58, %v792_v57 }
 0x11f   :  { %v831_v59 = vpop.f32.mrf.mxu2 }
 0x120   :  { %v832_v61 = vadd.f32 %v831_v59, %v812_v60 }
 0x122   :  { %v851_v62 = vpop.f32.mrf.mxu3 }
 0x123   :  { %v852_v0 = vadd.f32 %v851_v62, %v832_v61 }
 0x13b   :  { %v871_v63 = vpop.f32.mrf.mxu0 }
 0x13c   :  { %v872_v1 = vadd.f32 %v871_v63, %v852_v0 }
 0x13e   :  { %v891_v2 = vpop.f32.mrf.mxu1 }
 0x13f   :  { %v892_v4 = vadd.f32 %v891_v2, %v872_v1 }
 0x141   :  { %v911_v3 = vpop.f32.mrf.mxu2 }
 0x142   :  { %v912_v5 = vadd.f32 %v911_v3, %v892_v4 }
 0x144   :  { %v931_v6 = vpop.f32.mrf.mxu3 }
 0x145   :  { %v932_v7 = vadd.f32 %v931_v6, %v912_v5 }
 0x15d   :  { %v951_v8 = vpop.f32.mrf.mxu0 }
 0x15e   :  { %v952_v9 = vadd.f32 %v951_v8, %v932_v7 }
 0x15f   :  { %v971_v10 = vpop.f32.mrf.mxu1 }
 0x160   :  { %v972_v11 = vadd.f32 %v971_v10, %v952_v9 }
 0x163   :  { %v991_v12 = vpop.f32.mrf.mxu2 }
 0x164   :  { %v992_v13 = vadd.f32 %v991_v12, %v972_v11 }
 0x165   :  { %v1011_v14 = vpop.f32.mrf.mxu3 }
 0x166   :  { %v1012_v15 = vadd.f32 %v1011_v14, %v992_v13 }
 0x168   :  { %v1014_v16 = vmul.f32 0.2, %v1012_v15 }
 0x16a   :  { %v1015_v18 = vmax.f32 %v1012_v15, %v1014_v16 }
 0x16c   :  { %v1020_v19 = vmul.f32 %v1066_v17, %v1015_v18 }
 0x16e   :  { %v1022_v20 = vsel %vm1021_vm0, %v1020_v19, 0.0 }
 0x16f   :  { %1023 = vadd.xlane.f32.xlu0 %v1022_v20 }
 0x1e2   :  { %v1024_v22 = vpop.xlane.xlu0 %1023 }
 0x1e3   :  { %v1029_v23 = vadd.f32 %v1067_v21, %v1024_v22 }
 0x1e5   :  { %v1058_v24 = vmul.f32 -1.442695, %v1029_v23 }
 0x1e7   :  { %1068 = vpow2.f32 %v1058_v24 }
 0x1ed   :  { %v1069_v25 = vpop.eup %1068 }
 0x1ee   :  { %v1033_v26 = vadd.f32 1.0, %v1069_v25 }
 0x1f0   :  { %1070 = vrcp.f32 %v1033_v26  ;;  %v1045_v35 = vand.u32 2147483648, %v1033_v26  ;;  %v1043_v27 = vand.u32 2147483647, %v1033_v26  ;;  %vm1039_vm2 = vweird.f32 %v1033_v26 }
 0x1f2   :  { %v1046_v32 = vor.u32 1.1754944e-38, %v1045_v35  ;;  %vm1044_vm5 = vcmp.eq.f32.partialorder %v1043_v27, 8.507059e+37 }
 0x1f6   :  { %v1071_v30 = vpop.eup %1070 }
 0x1f7   :  { %v1035_v31 = vmul.f32 %v1071_v30, %v1033_v26  ;;  %vm1040_vm1 = vweird.f32 %v1071_v30 }
 0x1f8   :  { %vm1041_vm3 = vmor %vm1039_vm2, %vm1040_vm1 }
 0x1f9   :  { %v1036_v34 = vsub.f32 1.0, %v1035_v31 }
 0x1fb   :  { %v1037_v29 = vmul.f32 %v1071_v30, %v1036_v34 }
 0x1fd   :  { %v1038_v28 = vadd.f32 %v1071_v30, %v1037_v29 }
 0x1ff   :  { %v1042_v37 = vsel %vm1041_vm3, %v1071_v30, %v1038_v28 }
 0x200   :  { %v1047_v38 = vsel %vm1044_vm5, %v1046_v32, %v1042_v37 }
 0x201   :  { %1050 = vst.msk [vmem:[%s1275_s5] sm:$0x3] %vm1049_vm4, %v1047_v38 }
 0x202   :  { %1055 = vsyncpa [#allocation4], 1 }
 0x203   :  { %1056 = vsyncpa [#allocation6], 1 }
 0x204   :  { %1057 = vsyncpa [#allocation9], 1 }

// kernel: tpu_custom_call.1
= control target key start
LH: loop header
LB: loop body
LE: loop exit
PB: predicated region body
PF: predicated region fallthrough
CT: control target
= control target key end

     0   :  { %s1270_s0 = inlined_call_operand.hbm [shape: f32[2,3072], index: 0, kind: input, shape index: {}]   ;;  %s1271_s1 = inlined_call_operand.hbm [shape: f32[3072,128], index: 1, kind: input, shape index: {}]   ;;  %s1272_s2 = inlined_call_operand.hbm [shape: f32[1,128], index: 2, kind: input, shape index: {}]   ;;  %s1273_s3 = inlined_call_operand.hbm [shape: f32[1,128], index: 3, kind: input, shape index: {}]   ;;  %s1274_s4 = inlined_call_operand.<no memory space> [shape: f32[1,1], index: 4, kind: input, shape index: {}]   ;;  %s1275_s5 = inlined_call_operand.vmem [shape: f32[2,1], index: 5, kind: output, shape index: {}]  }
   0x1   :  { %v10_v0 = vstv %s1274_s4 }
   0x2   :  { %11 = vst [vmem:[#allocation2] sm:$0x1] %v10_v0 }
   0x3   :  { %12 = vsyncpa [#allocation4], 0 }
   0x4   :  { %13 = vsyncpa [#allocation6], 0  ;;  %s30_s22 = sshll.u32 %s1271_s1, 4  ;;  %s31_s22 = int_to_ptr.hbm [resolvable:$true] %s30_s22 }
   0x5   :  { %14 = vsyncpa [#allocation9], 0  ;;  %s1174_s23 = smov [#allocation5]   ;;  %s20_s27 = sshll.u32 %s1270_s0, 4  ;;  %s21_s27 = int_to_ptr.hbm [resolvable:$true] %s20_s27 }
   0x6   :  { %s32_s24 = sshll.u32 %s1174_s23, 4  ;;  %s1175_s28 = smov 128   ;;  %s33_s24 = int_to_ptr.vmem [resolvable:$true] %s32_s24 }
   0x7   :  { %s1176_s29 = smov 8   ;;  %s1177_s4 = smov [#allocation3]  }
   0x8   :  { %38 = dma.hbm_to_vmem [thread:$0]  %s31_s22, 49152, %s33_s24, [#allocation6], %s1175_s28, %s1175_s28, %s1176_s29  }
   0x9   :  { %s22_s30 = sshll.u32 %s1177_s4, 4  ;;  %s44_s8 = sshll.u32 %s1272_s2, 4  ;;  %s23_s30 = int_to_ptr.vmem [resolvable:$true] %s22_s30  ;;  %s45_s8 = int_to_ptr.hbm [resolvable:$true] %s44_s8 }
   0xa   :  { %25 = dma.hbm_to_vmem [thread:$0]  %s21_s27, 768, %s23_s30, [#allocation4]  }
   0xb   :  { %s55_s10 = sshll.u32 %s1273_s3, 4  ;;  %s1178_s11 = smov [#allocation7]   ;;  %s56_s10 = int_to_ptr.hbm [resolvable:$true] %s55_s10 }
   0xc   :  { %s46_s12 = sshll.u32 %s1178_s11, 4  ;;  %s1179_s0 = smov [#allocation8]   ;;  %s47_s12 = int_to_ptr.vmem [resolvable:$true] %s46_s12 }
   0xd   :  { %49 = dma.hbm_to_vmem [thread:$0]  %s45_s8, 16, %s47_s12, [#allocation6]  }
   0xe   :  { %s57_s13 = sshll.u32 %s1179_s0, 4  ;;  %s58_s13 = int_to_ptr.vmem [resolvable:$true] %s57_s13 }
   0xf   :  { %60 = dma.hbm_to_vmem [thread:$0]  %s56_s10, 16, %s58_s13, [#allocation9]  }
  0x10   :  { %1168 = dma.done.wait [#allocation4], 768  }
  0x11   :  { %1169 = vsyncadd [#allocation4], 4294966528 }
  0x12   :  { %1170 = dma.done.wait [#allocation6], 49168  }
  0x13   :  { %1171 = vsyncadd [#allocation6], 4294918128 }
  0x14   :  { %1172 = dma.done.wait [#allocation9], 16  }
  0x15   :  { %1173 = vsyncadd [#allocation9], 4294967280  ;;  %v100_v1 = vld [vmem:[#allocation5 + $0x78] sm:$0xff]  ;;  %v99_v3 = vld [vmem:[#allocation5 + $0x70] sm:$0xff]  ;;  %vm1021_vm0 = vcmask 1041408   ;;  %vm1049_vm4 = vcmask 1024  }
  0x16   :  { %v132_v2 = vld [vmem:[#allocation5 + $0x178] sm:$0xff]  ;;  %534 = vmatpush.msra.mxu0 %v100_v1  ;;  %v131_v5 = vld [vmem:[#allocation5 + $0x170] sm:$0xff]  ;;  %v98_v7 = vld [vmem:[#allocation5 + $0x68] sm:$0xff] }
  0x17   :  { %574 = vmatpush.msra.mxu2 %v132_v2  ;;  %v116_v4 = vld [vmem:[#allocation5 + $0xf8] sm:$0xff]  ;;  %v115_v8 = vld [vmem:[#allocation5 + $0xf0] sm:$0xff]  ;;  %v130_v9 = vld [vmem:[#allocation5 + $0x168] sm:$0xff] }
  0x18   :  { %v148_v6 = vld [vmem:[#allocation5 + $0x1f8] sm:$0xff]  ;;  %554 = vmatpush.msra.mxu1 %v116_v4  ;;  %535 = vmatpush.msra.mxu0 %v99_v3  ;;  %v147_v10 = vld [vmem:[#allocation5 + $0x1f0] sm:$0xff]  ;;  %v114_v11 = vld [vmem:[#allocation5 + $0xe8] sm:$0xff] }
  0x19   :  { %594 = vmatpush.msra.mxu3 %v148_v6  ;;  %575 = vmatpush.msra.mxu2 %v131_v5  ;;  %v97_v12 = vld [vmem:[#allocation5 + $0x60] sm:$0xff]  ;;  %v146_v14 = vld [vmem:[#allocation5 + $0x1e8] sm:$0xff]  ;;  %v96_v17 = vld [vmem:[#allocation5 + $0x58] sm:$0xff] }
  0x1a   :  { %555 = vmatpush.msra.mxu1 %v115_v8  ;;  %v129_v13 = vld [vmem:[#allocation5 + $0x160] sm:$0xff]  ;;  %536 = vmatpush.msra.mxu0 %v98_v7  ;;  %v128_v18 = vld [vmem:[#allocation5 + $0x158] sm:$0xff]  ;;  %v95_v21 = vld [vmem:[#allocation5 + $0x50] sm:$0xff] }
  0x1b   :  { %595 = vmatpush.msra.mxu3 %v147_v10  ;;  %576 = vmatpush.msra.mxu2 %v130_v9  ;;  %v113_v15 = vld [vmem:[#allocation5 + $0xe0] sm:$0xff]  ;;  %v112_v19 = vld [vmem:[#allocation5 + $0xd8] sm:$0xff]  ;;  %v127_v22 = vld [vmem:[#allocation5 + $0x150] sm:$0xff] }
  0x1c   :  { %v145_v16 = vld [vmem:[#allocation5 + $0x1e0] sm:$0xff]  ;;  %556 = vmatpush.msra.mxu1 %v114_v11  ;;  %537 = vmatpush.msra.mxu0 %v97_v12  ;;  %v144_v20 = vld [vmem:[#allocation5 + $0x1d8] sm:$0xff]  ;;  %v111_v23 = vld [vmem:[#allocation5 + $0xd0] sm:$0xff] }
  0x1d   :  { %596 = vmatpush.msra.mxu3 %v146_v14  ;;  %577 = vmatpush.msra.mxu2 %v129_v13  ;;  %v143_v24 = vld [vmem:[#allocation5 + $0x1d0] sm:$0xff]  ;;  %v94_v25 = vld [vmem:[#allocation5 + $0x48] sm:$0xff]  ;;  %v93_v29 = vld [vmem:[#allocation5 + $0x40] sm:$0xff] }
  0x1e   :  { %557 = vmatpush.msra.mxu1 %v113_v15  ;;  %538 = vmatpush.msra.mxu0 %v96_v17  ;;  %v126_v26 = vld [vmem:[#allocation5 + $0x148] sm:$0xff]  ;;  %v125_v30 = vld [vmem:[#allocation5 + $0x140] sm:$0xff]  ;;  %v92_v33 = vld [vmem:[#allocation5 + $0x38] sm:$0xff] }
  0x1f   :  { %597 = vmatpush.msra.mxu3 %v145_v16  ;;  %578 = vmatpush.msra.mxu2 %v128_v18  ;;  %v110_v27 = vld [vmem:[#allocation5 + $0xc8] sm:$0xff]  ;;  %v109_v31 = vld [vmem:[#allocation5 + $0xc0] sm:$0xff]  ;;  %v124_v34 = vld [vmem:[#allocation5 + $0x138] sm:$0xff] }
  0x20   :  { %558 = vmatpush.msra.mxu1 %v112_v19  ;;  %539 = vmatpush.msra.mxu0 %v95_v21  ;;  %v142_v28 = vld [vmem:[#allocation5 + $0x1c8] sm:$0xff]  ;;  %v141_v32 = vld [vmem:[#allocation5 + $0x1c0] sm:$0xff]  ;;  %v108_v35 = vld [vmem:[#allocation5 + $0xb8] sm:$0xff] }
  0x21   :  { %598 = vmatpush.msra.mxu3 %v144_v20  ;;  %579 = vmatpush.msra.mxu2 %v127_v22  ;;  %v140_v36 = vld [vmem:[#allocation5 + $0x1b8] sm:$0xff]  ;;  %v91_v37 = vld [vmem:[#allocation5 + $0x30] sm:$0xff]  ;;  %v90_v41 = vld [vmem:[#allocation5 + $0x28] sm:$0xff] }
  0x22   :  { %559 = vmatpush.msra.mxu1 %v111_v23  ;;  %540 = vmatpush.msra.mxu0 %v94_v25  ;;  %v123_v38 = vld [vmem:[#allocation5 + $0x130] sm:$0xff]  ;;  %v122_v42 = vld [vmem:[#allocation5 + $0x128] sm:$0xff]  ;;  %v89_v45 = vld [vmem:[#allocation5 + $0x20] sm:$0xff] }
  0x23   :  { %599 = vmatpush.msra.mxu3 %v143_v24  ;;  %580 = vmatpush.msra.mxu2 %v126_v26  ;;  %v107_v39 = vld [vmem:[#allocation5 + $0xb0] sm:$0xff]  ;;  %v106_v43 = vld [vmem:[#allocation5 + $0xa8] sm:$0xff]  ;;  %v121_v46 = vld [vmem:[#allocation5 + $0x120] sm:$0xff] }
  0x24   :  { %560 = vmatpush.msra.mxu1 %v110_v27  ;;  %541 = vmatpush.msra.mxu0 %v93_v29  ;;  %v139_v40 = vld [vmem:[#allocation5 + $0x1b0] sm:$0xff]  ;;  %v138_v44 = vld [vmem:[#allocation5 + $0x1a8] sm:$0xff]  ;;  %v105_v47 = vld [vmem:[#allocation5 + $0xa0] sm:$0xff] }
  0x25   :  { %600 = vmatpush.msra.mxu3 %v142_v28  ;;  %581 = vmatpush.msra.mxu2 %v125_v30  ;;  %v137_v48 = vld [vmem:[#allocation5 + $0x1a0] sm:$0xff]  ;;  %v88_v49 = vld [vmem:[#allocation5 + $0x18] sm:$0xff]  ;;  %v87_v53 = vld [vmem:[#allocation5 + $0x10] sm:$0xff] }
  0x26   :  { %561 = vmatpush.msra.mxu1 %v109_v31  ;;  %542 = vmatpush.msra.mxu0 %v92_v33  ;;  %v120_v50 = vld [vmem:[#allocation5 + $0x118] sm:$0xff]  ;;  %v119_v54 = vld [vmem:[#allocation5 + $0x110] sm:$0xff]  ;;  %v86_v57 = vld [vmem:[#allocation5 + $0x8] sm:$0xff] }
  0x27   :  { %601 = vmatpush.msra.mxu3 %v141_v32  ;;  %582 = vmatpush.msra.mxu2 %v124_v34  ;;  %v104_v51 = vld [vmem:[#allocation5 + $0x98] sm:$0xff]  ;;  %v103_v55 = vld [vmem:[#allocation5 + $0x90] sm:$0xff]  ;;  %v118_v58 = vld [vmem:[#allocation5 + $0x108] sm:$0xff] }
  0x28   :  { %562 = vmatpush.msra.mxu1 %v108_v35  ;;  %543 = vmatpush.msra.mxu0 %v91_v37  ;;  %v136_v52 = vld [vmem:[#allocation5 + $0x198] sm:$0xff]  ;;  %v135_v56 = vld [vmem:[#allocation5 + $0x190] sm:$0xff]  ;;  %v102_v59 = vld [vmem:[#allocation5 + $0x88] sm:$0xff] }
  0x29   :  { %602 = vmatpush.msra.mxu3 %v140_v36  ;;  %583 = vmatpush.msra.mxu2 %v123_v38  ;;  %v134_v60 = vld [vmem:[#allocation5 + $0x188] sm:$0xff]  ;;  %v85_v61 = vld [vmem:[#allocation5] sm:$0xff]  ;;  %v164_v63 = vld [vmem:[#allocation5 + $0x278] sm:$0xff] }
  0x2a   :  { %563 = vmatpush.msra.mxu1 %v107_v39  ;;  %544 = vmatpush.msra.mxu0 %v90_v41  ;;  %v117_v62 = vld [vmem:[#allocation5 + $0x100] sm:$0xff]  ;;  %v196_v0 = vld [vmem:[#allocation5 + $0x378] sm:$0xff]  ;;  %v163_v3 = vld [vmem:[#allocation5 + $0x270] sm:$0xff] }
  0x2b   :  { %603 = vmatpush.msra.mxu3 %v139_v40  ;;  %584 = vmatpush.msra.mxu2 %v122_v42  ;;  %v101_v1 = vld [vmem:[#allocation5 + $0x80] sm:$0xff]  ;;  %v180_v4 = vld [vmem:[#allocation5 + $0x2f8] sm:$0xff]  ;;  %v195_v5 = vld [vmem:[#allocation5 + $0x370] sm:$0xff] }
  0x2c   :  { %564 = vmatpush.msra.mxu1 %v106_v43  ;;  %545 = vmatpush.msra.mxu0 %v89_v45  ;;  %v133_v2 = vld [vmem:[#allocation5 + $0x180] sm:$0xff]  ;;  %v212_v6 = vld [vmem:[#allocation5 + $0x3f8] sm:$0xff]  ;;  %v162_v7 = vld [vmem:[#allocation5 + $0x268] sm:$0xff] }
  0x2d   :  { %604 = vmatpush.msra.mxu3 %v138_v44  ;;  %585 = vmatpush.msra.mxu2 %v121_v46  ;;  %v179_v8 = vld [vmem:[#allocation5 + $0x2f0] sm:$0xff]  ;;  %v194_v9 = vld [vmem:[#allocation5 + $0x368] sm:$0xff]  ;;  %v161_v11 = vld [vmem:[#allocation5 + $0x260] sm:$0xff] }
  0x2e   :  { %565 = vmatpush.msra.mxu1 %v105_v47  ;;  %546 = vmatpush.msra.mxu0 %v88_v49  ;;  %v211_v10 = vld [vmem:[#allocation5 + $0x3f0] sm:$0xff]  ;;  %v178_v12 = vld [vmem:[#allocation5 + $0x2e8] sm:$0xff]  ;;  %v193_v13 = vld [vmem:[#allocation5 + $0x360] sm:$0xff] }
  0x2f   :  { %605 = vmatpush.msra.mxu3 %v137_v48  ;;  %586 = vmatpush.msra.mxu2 %v120_v50  ;;  %v210_v14 = vld [vmem:[#allocation5 + $0x3e8] sm:$0xff]  ;;  %v160_v15 = vld [vmem:[#allocation5 + $0x258] sm:$0xff]  ;;  %v177_v16 = vld [vmem:[#allocation5 + $0x2e0] sm:$0xff] }
  0x30   :  { %566 = vmatpush.msra.mxu1 %v104_v51  ;;  %547 = vmatpush.msra.mxu0 %v87_v53  ;;  %v192_v17 = vld [vmem:[#allocation5 + $0x358] sm:$0xff]  ;;  %v209_v18 = vld [vmem:[#allocation5 + $0x3e0] sm:$0xff]  ;;  %v159_v19 = vld [vmem:[#allocation5 + $0x250] sm:$0xff] }
  0x31   :  { %606 = vmatpush.msra.mxu3 %v136_v52  ;;  %587 = vmatpush.msra.mxu2 %v119_v54  ;;  %v176_v20 = vld [vmem:[#allocation5 + $0x2d8] sm:$0xff]  ;;  %v191_v21 = vld [vmem:[#allocation5 + $0x350] sm:$0xff]  ;;  %v158_v23 = vld [vmem:[#allocation5 + $0x248] sm:$0xff] }
  0x32   :  { %567 = vmatpush.msra.mxu1 %v103_v55  ;;  %548 = vmatpush.msra.mxu0 %v86_v57  ;;  %v208_v22 = vld [vmem:[#allocation5 + $0x3d8] sm:$0xff]  ;;  %v175_v24 = vld [vmem:[#allocation5 + $0x2d0] sm:$0xff]  ;;  %v190_v25 = vld [vmem:[#allocation5 + $0x348] sm:$0xff] }
  0x33   :  { %607 = vmatpush.msra.mxu3 %v135_v56  ;;  %588 = vmatpush.msra.mxu2 %v118_v58  ;;  %v207_v26 = vld [vmem:[#allocation5 + $0x3d0] sm:$0xff]  ;;  %v157_v28 = vld [vmem:[#allocation5 + $0x240] sm:$0xff]  ;;  %v174_v29 = vld [vmem:[#allocation5 + $0x2c8] sm:$0xff] }
  0x34   :  { %568 = vmatpush.msra.mxu1 %v102_v59  ;;  %549 = vmatpush.msra.mxu0 %v85_v61  ;;  %v79_v27 = vld [vmem:[#allocation3] sm:$0xff]  ;;  %v189_v30 = vld [vmem:[#allocation5 + $0x340] sm:$0xff]  ;;  %v206_v31 = vld [vmem:[#allocation5 + $0x3c8] sm:$0xff] }
  0x35   :  { %608 = vmatpush.msra.mxu3 %v134_v60  ;;  %589 = vmatpush.msra.mxu2 %v117_v62  ;;  %479 = vst [vmem:[#allocation1] ss:$4 sm:$0xff] %v79_v27  ;;  %v156_v32 = vld [vmem:[#allocation5 + $0x238] sm:$0xff]  ;;  %v173_v33 = vld [vmem:[#allocation5 + $0x2c0] sm:$0xff]  ;;  %v155_v36 = vld [vmem:[#allocation5 + $0x230] sm:$0xff] }
  0x36   :  { %614 = vmatpush.msrb.mxu0 %v164_v63  ;;  %569 = vmatpush.msra.mxu1 %v101_v1  ;;  %v188_v34 = vld [vmem:[#allocation5 + $0x338] sm:$0xff]  ;;  %v205_v35 = vld [vmem:[#allocation5 + $0x3c0] sm:$0xff]  ;;  %v187_v38 = vld [vmem:[#allocation5 + $0x330] sm:$0xff] }
  0x37   :  { %654 = vmatpush.msrb.mxu2 %v196_v0  ;;  %609 = vmatpush.msra.mxu3 %v133_v2  ;;  %v172_v37 = vld [vmem:[#allocation5 + $0x2b8] sm:$0xff]  ;;  %v154_v40 = vld [vmem:[#allocation5 + $0x228] sm:$0xff]  ;;  %v171_v41 = vld [vmem:[#allocation5 + $0x2b0] sm:$0xff] }
  0x38   :  { %615 = vmatpush.msrb.mxu0 %v163_v3  ;;  %634 = vmatpush.msrb.mxu1 %v180_v4  ;;  %v204_v39 = vld [vmem:[#allocation5 + $0x3b8] sm:$0xff]  ;;  %v186_v42 = vld [vmem:[#allocation5 + $0x328] sm:$0xff]  ;;  %v203_v43 = vld [vmem:[#allocation5 + $0x3b0] sm:$0xff] }
  0x39   :  { %655 = vmatpush.msrb.mxu2 %v195_v5  ;;  %674 = vmatpush.msrb.mxu3 %v212_v6  ;;  %v80_v44 = vld [vmem:[#allocation3 + $0x8] sm:$0xff]  ;;  %v153_v45 = vld [vmem:[#allocation5 + $0x220] sm:$0xff]  ;;  %v170_v46 = vld [vmem:[#allocation5 + $0x2a8] sm:$0xff] }
  0x3a   :  { %616 = vmatpush.msrb.mxu0 %v162_v7  ;;  %635 = vmatpush.msrb.mxu1 %v179_v8  ;;  %v81_v47 = vld [vmem:[#allocation3 + $0x10] sm:$0xff]  ;;  %481 = vst [vmem:[#allocation1 + $0x20] ss:$4 sm:$0xff] %v80_v44  ;;  %v202_v53 = vld [vmem:[#allocation5 + $0x3a8] sm:$0xff]  ;;  %v152_v54 = vld [vmem:[#allocation5 + $0x218] sm:$0xff] }
  0x3b   :  { %656 = vmatpush.msrb.mxu2 %v194_v9  ;;  %675 = vmatpush.msrb.mxu3 %v211_v10  ;;  %v185_v48 = vld [vmem:[#allocation5 + $0x320] sm:$0xff]  ;;  %v184_v56 = vld [vmem:[#allocation5 + $0x318] sm:$0xff]  ;;  %v151_v58 = vld [vmem:[#allocation5 + $0x210] sm:$0xff] }
  0x3c   :  { %617 = vmatpush.msrb.mxu0 %v161_v11  ;;  %636 = vmatpush.msrb.mxu1 %v178_v12  ;;  %v482_v49 = vld.sshfl [vmem:[#allocation1] sm:$0xff pattern:$0x73625140]  ;;  %v484_v50 = vld.sshfl [vmem:[#allocation1 + $0x10] sm:$0xff pattern:$0x73625140] }
  0x3d   :  { %657 = vmatpush.msrb.mxu2 %v193_v13  ;;  %676 = vmatpush.msrb.mxu3 %v210_v14  ;;  %v1225_v51 = vld.sshfl [vmem:[#allocation1 + $0x8] sm:$0xff pattern:$0x73625140]  ;;  %v1227_v52 = vld.sshfl [vmem:[#allocation1 + $0x18] sm:$0xff pattern:$0x73625140] }
  0x3e   :  { %618 = vmatpush.msrb.mxu0 %v160_v15  ;;  %637 = vmatpush.msrb.mxu1 %v177_v16  ;;  %v169_v55 = vld [vmem:[#allocation5 + $0x2a0] sm:$0xff]  ;;  %490 = vst [vmem:[#allocation1] ss:$4 sm:$0xff] %v81_v47  ;;  %v168_v59 = vld [vmem:[#allocation5 + $0x298] sm:$0xff]  ;;  %v183_v60 = vld [vmem:[#allocation5 + $0x310] sm:$0xff] }
  0x3f   :  { %658 = vmatpush.msrb.mxu2 %v192_v17  ;;  %677 = vmatpush.msrb.mxu3 %v209_v18  ;;  %v201_v57 = vld [vmem:[#allocation5 + $0x3a0] sm:$0xff]  ;;  %v200_v61 = vld [vmem:[#allocation5 + $0x398] sm:$0xff]  ;;  %v150_v62 = vld [vmem:[#allocation5 + $0x208] sm:$0xff] }
  0x40   :  { %619 = vmatpush.msrb.mxu0 %v159_v19  ;;  %638 = vmatpush.msrb.mxu1 %v176_v20  ;;  %v167_v63 = vld [vmem:[#allocation5 + $0x290] sm:$0xff]  ;;  %v82_v0 = vld [vmem:[#allocation3 + $0x18] sm:$0xff]  ;;  %v149_v7 = vld [vmem:[#allocation5 + $0x200] sm:$0xff] }
  0x41   :  { %659 = vmatpush.msrb.mxu2 %v191_v21  ;;  %678 = vmatpush.msrb.mxu3 %v208_v22  ;;  %v1229_v1 = vld.sshfl [vmem:[#allocation1 + $0x30] sm:$0xff pattern:$0x73625140]  ;;  %v1231_v2 = vld.sshfl [vmem:[#allocation1 + $0x20] sm:$0xff pattern:$0x73625140] }
  0x42   :  { %620 = vmatpush.msrb.mxu0 %v158_v23  ;;  %639 = vmatpush.msrb.mxu1 %v175_v24  ;;  %v1233_v3 = vld.sshfl [vmem:[#allocation1 + $0x38] sm:$0xff pattern:$0x73625140]  ;;  %v1235_v4 = vld.sshfl [vmem:[#allocation1 + $0x28] sm:$0xff pattern:$0x73625140] }
  0x43   :  { %660 = vmatpush.msrb.mxu2 %v190_v25  ;;  %679 = vmatpush.msrb.mxu3 %v207_v26  ;;  %v182_v5 = vld [vmem:[#allocation5 + $0x308] sm:$0xff]  ;;  %v199_v6 = vld [vmem:[#allocation5 + $0x390] sm:$0xff]  ;;  %491 = vst [vmem:[#allocation1 + $0x20] ss:$4 sm:$0xff] %v82_v0  ;;  %v181_v9 = vld [vmem:[#allocation5 + $0x300] sm:$0xff] }
  0x44   :  { %621 = vmatpush.msrb.mxu0 %v157_v28  ;;  %640 = vmatpush.msrb.mxu1 %v174_v29  ;;  %v166_v8 = vld [vmem:[#allocation5 + $0x288] sm:$0xff]  ;;  %v228_v11 = vld [vmem:[#allocation5 + $0x478] sm:$0xff]  ;;  %v165_v13 = vld [vmem:[#allocation5 + $0x280] sm:$0xff] }
  0x45   :  { %661 = vmatpush.msrb.mxu2 %v189_v30  ;;  %680 = vmatpush.msrb.mxu3 %v206_v31  ;;  %v198_v10 = vld [vmem:[#allocation5 + $0x388] sm:$0xff]  ;;  %v260_v12 = vld [vmem:[#allocation5 + $0x578] sm:$0xff]  ;;  %v197_v14 = vld [vmem:[#allocation5 + $0x380] sm:$0xff] }
  0x46   :  { %622 = vmatpush.msrb.mxu0 %v156_v32  ;;  %641 = vmatpush.msrb.mxu1 %v173_v33  ;;  %v227_v15 = vld [vmem:[#allocation5 + $0x470] sm:$0xff]  ;;  %v244_v16 = vld [vmem:[#allocation5 + $0x4f8] sm:$0xff]  ;;  %v226_v19 = vld [vmem:[#allocation5 + $0x468] sm:$0xff] }
  0x47   :  { %662 = vmatpush.msrb.mxu2 %v188_v34  ;;  %681 = vmatpush.msrb.mxu3 %v205_v35  ;;  %v259_v17 = vld [vmem:[#allocation5 + $0x570] sm:$0xff]  ;;  %v276_v18 = vld [vmem:[#allocation5 + $0x5f8] sm:$0xff]  ;;  %v258_v21 = vld [vmem:[#allocation5 + $0x568] sm:$0xff] }
  0x48   :  { %623 = vmatpush.msrb.mxu0 %v155_v36  ;;  %642 = vmatpush.msrb.mxu1 %v172_v37  ;;  %v243_v20 = vld [vmem:[#allocation5 + $0x4f0] sm:$0xff]  ;;  %v225_v23 = vld [vmem:[#allocation5 + $0x460] sm:$0xff]  ;;  %v242_v24 = vld [vmem:[#allocation5 + $0x4e8] sm:$0xff] }
  0x49   :  { %663 = vmatpush.msrb.mxu2 %v187_v38  ;;  %682 = vmatpush.msrb.mxu3 %v204_v39  ;;  %v275_v22 = vld [vmem:[#allocation5 + $0x5f0] sm:$0xff]  ;;  %v257_v25 = vld [vmem:[#allocation5 + $0x560] sm:$0xff]  ;;  %v274_v26 = vld [vmem:[#allocation5 + $0x5e8] sm:$0xff] }
  0x4a   :  { %624 = vmatpush.msrb.mxu0 %v154_v40  ;;  %643 = vmatpush.msrb.mxu1 %v171_v41  ;;  %v1239_v27 = vld.sshfl [vmem:[#allocation1] sm:$0xff pattern:$0x73625140]  ;;  %v1241_v28 = vld.sshfl [vmem:[#allocation1 + $0x10] sm:$0xff pattern:$0x73625140] }
  0x4b   :  { %664 = vmatpush.msrb.mxu2 %v186_v42  ;;  %683 = vmatpush.msrb.mxu3 %v203_v43  ;;  %v1243_v29 = vld.sshfl [vmem:[#allocation1 + $0x8] sm:$0xff pattern:$0x73625140]  ;;  %v224_v30 = vld [vmem:[#allocation5 + $0x458] sm:$0xff]  ;;  %v241_v33 = vld [vmem:[#allocation5 + $0x4e0] sm:$0xff] }
  0x4c   :  { %625 = vmatpush.msrb.mxu0 %v153_v45  ;;  %644 = vmatpush.msrb.mxu1 %v170_v46  ;;  %v83_v31 = vld [vmem:[#allocation3 + $0x20] sm:$0xff]  ;;  %v1245_v32 = vld.sshfl [vmem:[#allocation1 + $0x18] sm:$0xff pattern:$0x73625140]  ;;  %v222_v40 = vld [vmem:[#allocation5 + $0x448] sm:$0xff] }
  0x4d   :  { %665 = vmatpush.msrb.mxu2 %v185_v48  ;;  %684 = vmatpush.msrb.mxu3 %v202_v53  ;;  %v256_v34 = vld [vmem:[#allocation5 + $0x558] sm:$0xff]  ;;  %500 = vst [vmem:[#allocation1] ss:$4 sm:$0xff] %v83_v31  ;;  %v273_v35 = vld [vmem:[#allocation5 + $0x5e0] sm:$0xff]  ;;  %v223_v36 = vld [vmem:[#allocation5 + $0x450] sm:$0xff] }
  0x4e   :  { %626 = vmatpush.msrb.mxu0 %v152_v54  ;;  %645 = vmatpush.msrb.mxu1 %v169_v55  ;;  %v240_v37 = vld [vmem:[#allocation5 + $0x4d8] sm:$0xff]  ;;  %v255_v38 = vld [vmem:[#allocation5 + $0x550] sm:$0xff]  ;;  %v254_v42 = vld [vmem:[#allocation5 + $0x548] sm:$0xff] }
  0x4f   :  { %666 = vmatpush.msrb.mxu2 %v184_v56  ;;  %685 = vmatpush.msrb.mxu3 %v201_v57  ;;  %v272_v39 = vld [vmem:[#allocation5 + $0x5d8] sm:$0xff]  ;;  %v239_v41 = vld [vmem:[#allocation5 + $0x4d0] sm:$0xff]  ;;  %v221_v44 = vld [vmem:[#allocation5 + $0x440] sm:$0xff] }
  0x50   :  { %627 = vmatpush.msrb.mxu0 %v151_v58  ;;  %646 = vmatpush.msrb.mxu1 %v168_v59  ;;  %v271_v43 = vld [vmem:[#allocation5 + $0x5d0] sm:$0xff]  ;;  %v238_v45 = vld [vmem:[#allocation5 + $0x4c8] sm:$0xff]  ;;  %v253_v46 = vld [vmem:[#allocation5 + $0x540] sm:$0xff] }
  0x51   :  { %667 = vmatpush.msrb.mxu2 %v183_v60  ;;  %686 = vmatpush.msrb.mxu3 %v200_v61  ;;  %v270_v47 = vld [vmem:[#allocation5 + $0x5c8] sm:$0xff]  ;;  %v220_v48 = vld [vmem:[#allocation5 + $0x438] sm:$0xff]  ;;  %v251_v54 = vld [vmem:[#allocation5 + $0x530] sm:$0xff] }
  0x52   :  { %628 = vmatpush.msrb.mxu0 %v150_v62  ;;  %647 = vmatpush.msrb.mxu1 %v167_v63  ;;  %v236_v53 = vld [vmem:[#allocation5 + $0x4b8] sm:$0xff]  ;;  %v218_v56 = vld [vmem:[#allocation5 + $0x428] sm:$0xff]  ;;  %v235_v57 = vld [vmem:[#allocation5 + $0x4b0] sm:$0xff] }
  0x53   :  { %668 = vmatpush.msrb.mxu2 %v182_v5  ;;  %687 = vmatpush.msrb.mxu3 %v199_v6  ;;  %v268_v55 = vld [vmem:[#allocation5 + $0x5b8] sm:$0xff]  ;;  %v250_v58 = vld [vmem:[#allocation5 + $0x528] sm:$0xff]  ;;  %v267_v59 = vld [vmem:[#allocation5 + $0x5b0] sm:$0xff] }
  0x54   :  { %629 = vmatpush.msrb.mxu0 %v149_v7  ;;  %648 = vmatpush.msrb.mxu1 %v166_v8  ;;  %v217_v60 = vld [vmem:[#allocation5 + $0x420] sm:$0xff]  ;;  %v234_v61 = vld [vmem:[#allocation5 + $0x4a8] sm:$0xff]  ;;  %v216_v0 = vld [vmem:[#allocation5 + $0x418] sm:$0xff] }
  0x55   :  { %669 = vmatpush.msrb.mxu2 %v181_v9  ;;  %688 = vmatpush.msrb.mxu3 %v198_v10  ;;  %v249_v62 = vld [vmem:[#allocation5 + $0x520] sm:$0xff]  ;;  %v266_v63 = vld [vmem:[#allocation5 + $0x5a8] sm:$0xff]  ;;  %v232_v5 = vld [vmem:[#allocation5 + $0x498] sm:$0xff] }
  0x56   :  { %550 = vmatmul.f32.vlgmr.msra.gmra.mxu0 %v482_v49  ;;  %590 = vmatmul.f32.vlgmr.msra.gmra.mxu2 %v484_v50  ;;  %v237_v49 = vld [vmem:[#allocation5 + $0x4c0] sm:$0xff]  ;;  %v252_v50 = vld [vmem:[#allocation5 + $0x538] sm:$0xff]  ;;  %v247_v6 = vld [vmem:[#allocation5 + $0x510] sm:$0xff] }
  0x57   :  { %694 = vmatpush.msra.mxu0 %v228_v11  ;;  %734 = vmatpush.msra.mxu2 %v260_v12  ;;  %v264_v7 = vld [vmem:[#allocation5 + $0x598] sm:$0xff]  ;;  %v214_v8 = vld [vmem:[#allocation5 + $0x408] sm:$0xff]  ;;  %v231_v9 = vld [vmem:[#allocation5 + $0x490] sm:$0xff] }
  0x58   :  { %649 = vmatpush.msrb.mxu1 %v165_v13  ;;  %689 = vmatpush.msrb.mxu3 %v197_v14  ;;  %v246_v10 = vld [vmem:[#allocation5 + $0x508] sm:$0xff]  ;;  %v263_v11 = vld [vmem:[#allocation5 + $0x590] sm:$0xff]  ;;  %v213_v12 = vld [vmem:[#allocation5 + $0x400] sm:$0xff] }
  0x59   :  { %570 = vmatmul.f32.vlgmr.msra.gmra.mxu1 %v1225_v51  ;;  %610 = vmatmul.f32.vlgmr.msra.gmra.mxu3 %v1227_v52  ;;  %v269_v51 = vld [vmem:[#allocation5 + $0x5c0] sm:$0xff]  ;;  %v219_v52 = vld [vmem:[#allocation5 + $0x430] sm:$0xff]  ;;  %v230_v13 = vld [vmem:[#allocation5 + $0x488] sm:$0xff] }
  0x5a   :  { %695 = vmatpush.msra.mxu0 %v227_v15  ;;  %714 = vmatpush.msra.mxu1 %v244_v16  ;;  %v245_v14 = vld [vmem:[#allocation5 + $0x500] sm:$0xff]  ;;  %v262_v15 = vld [vmem:[#allocation5 + $0x588] sm:$0xff]  ;;  %v292_v16 = vld [vmem:[#allocation5 + $0x678] sm:$0xff] }
  0x5b   :  { %735 = vmatpush.msra.mxu2 %v259_v17  ;;  %754 = vmatpush.msra.mxu3 %v276_v18  ;;  %v324_v17 = vld [vmem:[#allocation5 + $0x778] sm:$0xff]  ;;  %v229_v18 = vld [vmem:[#allocation5 + $0x480] sm:$0xff] }
  0x5c   :  { %696 = vmatpush.msra.mxu0 %v226_v19  ;;  %715 = vmatpush.msra.mxu1 %v243_v20  ;;  %v261_v19 = vld [vmem:[#allocation5 + $0x580] sm:$0xff]  ;;  %v291_v20 = vld [vmem:[#allocation5 + $0x670] sm:$0xff] }
  0x5d   :  { %736 = vmatpush.msra.mxu2 %v258_v21  ;;  %755 = vmatpush.msra.mxu3 %v275_v22  ;;  %v308_v21 = vld [vmem:[#allocation5 + $0x6f8] sm:$0xff]  ;;  %v323_v22 = vld [vmem:[#allocation5 + $0x770] sm:$0xff]  ;;  %v289_v31 = vld [vmem:[#allocation5 + $0x660] sm:$0xff] }
  0x5e   :  { %697 = vmatpush.msra.mxu0 %v225_v23  ;;  %716 = vmatpush.msra.mxu1 %v242_v24  ;;  %v340_v23 = vld [vmem:[#allocation5 + $0x7f8] sm:$0xff]  ;;  %v290_v24 = vld [vmem:[#allocation5 + $0x668] sm:$0xff] }
  0x5f   :  { %737 = vmatpush.msra.mxu2 %v257_v25  ;;  %756 = vmatpush.msra.mxu3 %v274_v26  ;;  %v307_v25 = vld [vmem:[#allocation5 + $0x6f0] sm:$0xff]  ;;  %v322_v26 = vld [vmem:[#allocation5 + $0x768] sm:$0xff] }
  0x60   :  { %670 = vmatmul.f32.vlgmr.msrb.gmra.mxu2 %v1229_v1  ;;  %698 = vmatpush.msra.mxu0 %v224_v30  ;;  %v233_v1 = vld [vmem:[#allocation5 + $0x4a0] sm:$0xff]  ;;  %v339_v30 = vld [vmem:[#allocation5 + $0x7f0] sm:$0xff] }
  0x61   :  { %717 = vmatpush.msra.mxu1 %v241_v33  ;;  %738 = vmatpush.msra.mxu2 %v256_v34  ;;  %v1259_v33 = vld.sshfl [vmem:[#allocation1 + $0x28] sm:$0xff pattern:$0x73625140] }
  0x62   :  { %757 = vmatpush.msra.mxu3 %v273_v35  ;;  %630 = vmatmul.f32.vlgmr.msrb.gmra.mxu0 %v1231_v2  ;;  %v248_v2 = vld [vmem:[#allocation5 + $0x518] sm:$0xff]  ;;  %v306_v34 = vld [vmem:[#allocation5 + $0x6e8] sm:$0xff] }
  0x63   :  { %690 = vmatmul.f32.vlgmr.msrb.gmra.mxu3 %v1233_v3  ;;  %699 = vmatpush.msra.mxu0 %v223_v36  ;;  %v265_v3 = vld [vmem:[#allocation5 + $0x5a0] sm:$0xff]  ;;  %v84_v35 = vld [vmem:[#allocation3 + $0x28] sm:$0xff] }
  0x64   :  { %718 = vmatpush.msra.mxu1 %v240_v37  ;;  %739 = vmatpush.msra.mxu2 %v255_v38  ;;  %v1261_v36 = vld.sshfl [vmem:[#allocation1 + $0x38] sm:$0xff pattern:$0x73625140] }
  0x65   :  { %758 = vmatpush.msra.mxu3 %v272_v39  ;;  %650 = vmatmul.f32.vlgmr.msrb.gmra.mxu1 %v1235_v4  ;;  %v215_v4 = vld [vmem:[#allocation5 + $0x410] sm:$0xff]  ;;  %v288_v37 = vld [vmem:[#allocation5 + $0x658] sm:$0xff]  ;;  %v305_v38 = vld [vmem:[#allocation5 + $0x6e0] sm:$0xff] }
  0x66   :  { %700 = vmatpush.msra.mxu0 %v222_v40  ;;  %719 = vmatpush.msra.mxu1 %v239_v41  ;;  %v320_v39 = vld [vmem:[#allocation5 + $0x758] sm:$0xff]  ;;  %v337_v40 = vld [vmem:[#allocation5 + $0x7e0] sm:$0xff]  ;;  %v287_v41 = vld [vmem:[#allocation5 + $0x650] sm:$0xff] }
  0x67   :  { %740 = vmatpush.msra.mxu2 %v254_v42  ;;  %759 = vmatpush.msra.mxu3 %v271_v43  ;;  %v304_v42 = vld [vmem:[#allocation5 + $0x6d8] sm:$0xff]  ;;  %v319_v43 = vld [vmem:[#allocation5 + $0x750] sm:$0xff] }
  0x68   :  { %701 = vmatpush.msra.mxu0 %v221_v44  ;;  %720 = vmatpush.msra.mxu1 %v238_v45  ;;  %v336_v44 = vld [vmem:[#allocation5 + $0x7d8] sm:$0xff]  ;;  %v286_v45 = vld [vmem:[#allocation5 + $0x648] sm:$0xff] }
  0x69   :  { %741 = vmatpush.msra.mxu2 %v253_v46  ;;  %760 = vmatpush.msra.mxu3 %v270_v47  ;;  %v303_v46 = vld [vmem:[#allocation5 + $0x6d0] sm:$0xff]  ;;  %v318_v47 = vld [vmem:[#allocation5 + $0x748] sm:$0xff] }
  0x6a   :  { %702 = vmatpush.msra.mxu0 %v220_v48  ;;  %721 = vmatpush.msra.mxu1 %v237_v49  ;;  %v335_v48 = vld [vmem:[#allocation5 + $0x7d0] sm:$0xff]  ;;  %v285_v49 = vld [vmem:[#allocation5 + $0x640] sm:$0xff] }
  0x6b   :  { %742 = vmatpush.msra.mxu2 %v252_v50  ;;  %761 = vmatpush.msra.mxu3 %v269_v51  ;;  %v302_v50 = vld [vmem:[#allocation5 + $0x6c8] sm:$0xff]  ;;  %v317_v51 = vld [vmem:[#allocation5 + $0x740] sm:$0xff] }
  0x6c   :  { %703 = vmatpush.msra.mxu0 %v219_v52  ;;  %722 = vmatpush.msra.mxu1 %v236_v53  ;;  %v334_v52 = vld [vmem:[#allocation5 + $0x7c8] sm:$0xff]  ;;  %v284_v53 = vld [vmem:[#allocation5 + $0x638] sm:$0xff] }
  0x6d   :  { %743 = vmatpush.msra.mxu2 %v251_v54  ;;  %762 = vmatpush.msra.mxu3 %v268_v55  ;;  %v301_v54 = vld [vmem:[#allocation5 + $0x6c0] sm:$0xff]  ;;  %v316_v55 = vld [vmem:[#allocation5 + $0x738] sm:$0xff] }
  0x6e   :  { %704 = vmatpush.msra.mxu0 %v218_v56  ;;  %723 = vmatpush.msra.mxu1 %v235_v57  ;;  %v333_v56 = vld [vmem:[#allocation5 + $0x7c0] sm:$0xff]  ;;  %v283_v57 = vld [vmem:[#allocation5 + $0x630] sm:$0xff] }
  0x6f   :  { %744 = vmatpush.msra.mxu2 %v250_v58  ;;  %763 = vmatpush.msra.mxu3 %v267_v59  ;;  %v300_v58 = vld [vmem:[#allocation5 + $0x6b8] sm:$0xff]  ;;  %v315_v59 = vld [vmem:[#allocation5 + $0x730] sm:$0xff] }
  0x70   :  { %705 = vmatpush.msra.mxu0 %v217_v60  ;;  %724 = vmatpush.msra.mxu1 %v234_v61  ;;  %v332_v60 = vld [vmem:[#allocation5 + $0x7b8] sm:$0xff]  ;;  %v282_v61 = vld [vmem:[#allocation5 + $0x628] sm:$0xff] }
  0x71   :  { %745 = vmatpush.msra.mxu2 %v249_v62  ;;  %764 = vmatpush.msra.mxu3 %v266_v63  ;;  %v299_v62 = vld [vmem:[#allocation5 + $0x6b0] sm:$0xff]  ;;  %v314_v63 = vld [vmem:[#allocation5 + $0x728] sm:$0xff] }
  0x72   :  { %706 = vmatpush.msra.mxu0 %v216_v0  ;;  %725 = vmatpush.msra.mxu1 %v233_v1  ;;  %v331_v0 = vld [vmem:[#allocation5 + $0x7b0] sm:$0xff]  ;;  %v281_v1 = vld [vmem:[#allocation5 + $0x620] sm:$0xff] }
  0x73   :  { %746 = vmatpush.msra.mxu2 %v248_v2  ;;  %765 = vmatpush.msra.mxu3 %v265_v3  ;;  %v298_v2 = vld [vmem:[#allocation5 + $0x6a8] sm:$0xff]  ;;  %v313_v3 = vld [vmem:[#allocation5 + $0x720] sm:$0xff] }
  0x74   :  { %707 = vmatpush.msra.mxu0 %v215_v4  ;;  %726 = vmatpush.msra.mxu1 %v232_v5  ;;  %v330_v4 = vld [vmem:[#allocation5 + $0x7a8] sm:$0xff]  ;;  %v280_v5 = vld [vmem:[#allocation5 + $0x618] sm:$0xff] }
  0x75   :  { %747 = vmatpush.msra.mxu2 %v247_v6  ;;  %766 = vmatpush.msra.mxu3 %v264_v7  ;;  %v297_v6 = vld [vmem:[#allocation5 + $0x6a0] sm:$0xff]  ;;  %v312_v7 = vld [vmem:[#allocation5 + $0x718] sm:$0xff] }
  0x76   :  { %708 = vmatpush.msra.mxu0 %v214_v8  ;;  %727 = vmatpush.msra.mxu1 %v231_v9  ;;  %v329_v8 = vld [vmem:[#allocation5 + $0x7a0] sm:$0xff]  ;;  %v279_v9 = vld [vmem:[#allocation5 + $0x610] sm:$0xff] }
  0x77   :  { %748 = vmatpush.msra.mxu2 %v246_v10  ;;  %767 = vmatpush.msra.mxu3 %v263_v11  ;;  %v296_v10 = vld [vmem:[#allocation5 + $0x698] sm:$0xff]  ;;  %v311_v11 = vld [vmem:[#allocation5 + $0x710] sm:$0xff] }
  0x78   :  { %709 = vmatpush.msra.mxu0 %v213_v12  ;;  %728 = vmatpush.msra.mxu1 %v230_v13  ;;  %v328_v12 = vld [vmem:[#allocation5 + $0x798] sm:$0xff]  ;;  %v278_v13 = vld [vmem:[#allocation5 + $0x608] sm:$0xff] }
  0x79   :  { %749 = vmatpush.msra.mxu2 %v245_v14  ;;  %768 = vmatpush.msra.mxu3 %v262_v15  ;;  %v295_v14 = vld [vmem:[#allocation5 + $0x690] sm:$0xff]  ;;  %v310_v15 = vld [vmem:[#allocation5 + $0x708] sm:$0xff] }
  0x7a   :  { %710 = vmatmul.f32.vlgmr.msra.gmra.mxu0 %v1239_v27  ;;  %750 = vmatmul.f32.vlgmr.msra.gmra.mxu2 %v1241_v28  ;;  %v1255_v27 = vld.sshfl [vmem:[#allocation1 + $0x20] sm:$0xff pattern:$0x73625140]  ;;  %v1257_v28 = vld.sshfl [vmem:[#allocation1 + $0x30] sm:$0xff pattern:$0x73625140] }
  0x7b   :  { %774 = vmatpush.msrb.mxu0 %v292_v16  ;;  %814 = vmatpush.msrb.mxu2 %v324_v17  ;;  %501 = vst [vmem:[#allocation1 + $0x20] ss:$4 sm:$0xff] %v84_v35  ;;  %v327_v16 = vld [vmem:[#allocation5 + $0x790] sm:$0xff]  ;;  %v277_v17 = vld [vmem:[#allocation5 + $0x600] sm:$0xff] }
  0x7c   :  { %729 = vmatpush.msra.mxu1 %v229_v18  ;;  %769 = vmatpush.msra.mxu3 %v261_v19  ;;  %v294_v18 = vld [vmem:[#allocation5 + $0x688] sm:$0xff]  ;;  %v309_v19 = vld [vmem:[#allocation5 + $0x700] sm:$0xff]  ;;  %v371_v35 = vld [vmem:[#allocation5 + $0x8f0] sm:$0xff] }
  0x7d   :  { %730 = vmatmul.f32.vlgmr.msra.gmra.mxu1 %v1243_v29  ;;  %770 = vmatmul.f32.vlgmr.msra.gmra.mxu3 %v1245_v32  ;;  %v321_v29 = vld [vmem:[#allocation5 + $0x760] sm:$0xff]  ;;  %v338_v32 = vld [vmem:[#allocation5 + $0x7e8] sm:$0xff] }
  0x7e   :  { %775 = vmatpush.msrb.mxu0 %v291_v20  ;;  %794 = vmatpush.msrb.mxu1 %v308_v21  ;;  %v326_v20 = vld [vmem:[#allocation5 + $0x788] sm:$0xff]  ;;  %v356_v21 = vld [vmem:[#allocation5 + $0x878] sm:$0xff] }
  0x7f   :  { %815 = vmatpush.msrb.mxu2 %v323_v22  ;;  %834 = vmatpush.msrb.mxu3 %v340_v23  ;;  %v388_v22 = vld [vmem:[#allocation5 + $0x978] sm:$0xff]  ;;  %v293_v23 = vld [vmem:[#allocation5 + $0x680] sm:$0xff] }
  0x80   :  { %776 = vmatpush.msrb.mxu0 %v290_v24  ;;  %795 = vmatpush.msrb.mxu1 %v307_v25  ;;  %v325_v24 = vld [vmem:[#allocation5 + $0x780] sm:$0xff]  ;;  %v355_v25 = vld [vmem:[#allocation5 + $0x870] sm:$0xff] }
  0x81   :  { %816 = vmatpush.msrb.mxu2 %v322_v26  ;;  %835 = vmatpush.msrb.mxu3 %v339_v30  ;;  %v372_v26 = vld [vmem:[#allocation5 + $0x8f8] sm:$0xff]  ;;  %v387_v30 = vld [vmem:[#allocation5 + $0x970] sm:$0xff] }
  0x82   :  { %777 = vmatpush.msrb.mxu0 %v289_v31  ;;  %796 = vmatpush.msrb.mxu1 %v306_v34  ;;  %v404_v31 = vld [vmem:[#allocation5 + $0x9f8] sm:$0xff]  ;;  %v354_v34 = vld [vmem:[#allocation5 + $0x868] sm:$0xff] }
  0x83   :  { %817 = vmatpush.msrb.mxu2 %v321_v29  ;;  %836 = vmatpush.msrb.mxu3 %v338_v32  ;;  %v386_v29 = vld [vmem:[#allocation5 + $0x968] sm:$0xff] }
  0x84   :  { %778 = vmatpush.msrb.mxu0 %v288_v37  ;;  %797 = vmatpush.msrb.mxu1 %v305_v38  ;;  %v370_v32 = vld [vmem:[#allocation5 + $0x8e8] sm:$0xff]  ;;  %v385_v37 = vld [vmem:[#allocation5 + $0x960] sm:$0xff] }
  0x85   :  { %818 = vmatpush.msrb.mxu2 %v320_v39  ;;  %837 = vmatpush.msrb.mxu3 %v337_v40  ;;  %v402_v38 = vld [vmem:[#allocation5 + $0x9e8] sm:$0xff]  ;;  %v352_v39 = vld [vmem:[#allocation5 + $0x858] sm:$0xff]  ;;  %v401_v40 = vld [vmem:[#allocation5 + $0x9e0] sm:$0xff] }
  0x86   :  { %779 = vmatpush.msrb.mxu0 %v287_v41  ;;  %798 = vmatpush.msrb.mxu1 %v304_v42  ;;  %v351_v41 = vld [vmem:[#allocation5 + $0x850] sm:$0xff]  ;;  %v368_v42 = vld [vmem:[#allocation5 + $0x8d8] sm:$0xff] }
  0x87   :  { %819 = vmatpush.msrb.mxu2 %v319_v43  ;;  %838 = vmatpush.msrb.mxu3 %v336_v44  ;;  %v383_v43 = vld [vmem:[#allocation5 + $0x950] sm:$0xff]  ;;  %v400_v44 = vld [vmem:[#allocation5 + $0x9d8] sm:$0xff] }
  0x88   :  { %780 = vmatpush.msrb.mxu0 %v286_v45  ;;  %799 = vmatpush.msrb.mxu1 %v303_v46  ;;  %v350_v45 = vld [vmem:[#allocation5 + $0x848] sm:$0xff]  ;;  %v367_v46 = vld [vmem:[#allocation5 + $0x8d0] sm:$0xff] }
  0x89   :  { %820 = vmatpush.msrb.mxu2 %v318_v47  ;;  %839 = vmatpush.msrb.mxu3 %v335_v48  ;;  %v382_v47 = vld [vmem:[#allocation5 + $0x948] sm:$0xff]  ;;  %v399_v48 = vld [vmem:[#allocation5 + $0x9d0] sm:$0xff] }
  0x8a   :  { %781 = vmatpush.msrb.mxu0 %v285_v49  ;;  %800 = vmatpush.msrb.mxu1 %v302_v50  ;;  %v349_v49 = vld [vmem:[#allocation5 + $0x840] sm:$0xff]  ;;  %v366_v50 = vld [vmem:[#allocation5 + $0x8c8] sm:$0xff] }
  0x8b   :  { %821 = vmatpush.msrb.mxu2 %v317_v51  ;;  %840 = vmatpush.msrb.mxu3 %v334_v52  ;;  %v381_v51 = vld [vmem:[#allocation5 + $0x940] sm:$0xff]  ;;  %v398_v52 = vld [vmem:[#allocation5 + $0x9c8] sm:$0xff] }
  0x8c   :  { %782 = vmatpush.msrb.mxu0 %v284_v53  ;;  %801 = vmatpush.msrb.mxu1 %v301_v54  ;;  %v348_v53 = vld [vmem:[#allocation5 + $0x838] sm:$0xff]  ;;  %v365_v54 = vld [vmem:[#allocation5 + $0x8c0] sm:$0xff] }
  0x8d   :  { %822 = vmatpush.msrb.mxu2 %v316_v55  ;;  %841 = vmatpush.msrb.mxu3 %v333_v56  ;;  %v380_v55 = vld [vmem:[#allocation5 + $0x938] sm:$0xff]  ;;  %v397_v56 = vld [vmem:[#allocation5 + $0x9c0] sm:$0xff] }
  0x8e   :  { %783 = vmatpush.msrb.mxu0 %v283_v57  ;;  %802 = vmatpush.msrb.mxu1 %v300_v58  ;;  %v347_v57 = vld [vmem:[#allocation5 + $0x830] sm:$0xff]  ;;  %v364_v58 = vld [vmem:[#allocation5 + $0x8b8] sm:$0xff] }
  0x8f   :  { %823 = vmatpush.msrb.mxu2 %v315_v59  ;;  %842 = vmatpush.msrb.mxu3 %v332_v60  ;;  %v379_v59 = vld [vmem:[#allocation5 + $0x930] sm:$0xff]  ;;  %v396_v60 = vld [vmem:[#allocation5 + $0x9b8] sm:$0xff] }
  0x90   :  { %784 = vmatpush.msrb.mxu0 %v282_v61  ;;  %803 = vmatpush.msrb.mxu1 %v299_v62  ;;  %v346_v61 = vld [vmem:[#allocation5 + $0x828] sm:$0xff]  ;;  %v363_v62 = vld [vmem:[#allocation5 + $0x8b0] sm:$0xff] }
  0x91   :  { %824 = vmatpush.msrb.mxu2 %v314_v63  ;;  %843 = vmatpush.msrb.mxu3 %v331_v0  ;;  %v378_v63 = vld [vmem:[#allocation5 + $0x928] sm:$0xff]  ;;  %v395_v0 = vld [vmem:[#allocation5 + $0x9b0] sm:$0xff] }
  0x92   :  { %785 = vmatpush.msrb.mxu0 %v281_v1  ;;  %804 = vmatpush.msrb.mxu1 %v298_v2  ;;  %v345_v1 = vld [vmem:[#allocation5 + $0x820] sm:$0xff]  ;;  %v362_v2 = vld [vmem:[#allocation5 + $0x8a8] sm:$0xff] }
  0x93   :  { %825 = vmatpush.msrb.mxu2 %v313_v3  ;;  %844 = vmatpush.msrb.mxu3 %v330_v4  ;;  %v377_v3 = vld [vmem:[#allocation5 + $0x920] sm:$0xff]  ;;  %v394_v4 = vld [vmem:[#allocation5 + $0x9a8] sm:$0xff] }
  0x94   :  { %786 = vmatpush.msrb.mxu0 %v280_v5  ;;  %805 = vmatpush.msrb.mxu1 %v297_v6  ;;  %v344_v5 = vld [vmem:[#allocation5 + $0x818] sm:$0xff]  ;;  %v361_v6 = vld [vmem:[#allocation5 + $0x8a0] sm:$0xff] }
  0x95   :  { %826 = vmatpush.msrb.mxu2 %v312_v7  ;;  %845 = vmatpush.msrb.mxu3 %v329_v8  ;;  %v376_v7 = vld [vmem:[#allocation5 + $0x918] sm:$0xff]  ;;  %v393_v8 = vld [vmem:[#allocation5 + $0x9a0] sm:$0xff] }
  0x96   :  { %787 = vmatpush.msrb.mxu0 %v279_v9  ;;  %806 = vmatpush.msrb.mxu1 %v296_v10  ;;  %v343_v9 = vld [vmem:[#allocation5 + $0x810] sm:$0xff]  ;;  %v360_v10 = vld [vmem:[#allocation5 + $0x898] sm:$0xff] }
  0x97   :  { %827 = vmatpush.msrb.mxu2 %v311_v11  ;;  %846 = vmatpush.msrb.mxu3 %v328_v12  ;;  %v375_v11 = vld [vmem:[#allocation5 + $0x910] sm:$0xff]  ;;  %v392_v12 = vld [vmem:[#allocation5 + $0x998] sm:$0xff] }
  0x98   :  { %788 = vmatpush.msrb.mxu0 %v278_v13  ;;  %807 = vmatpush.msrb.mxu1 %v295_v14  ;;  %v342_v13 = vld [vmem:[#allocation5 + $0x808] sm:$0xff]  ;;  %v359_v14 = vld [vmem:[#allocation5 + $0x890] sm:$0xff] }
  0x99   :  { %828 = vmatpush.msrb.mxu2 %v310_v15  ;;  %847 = vmatpush.msrb.mxu3 %v327_v16  ;;  %v374_v15 = vld [vmem:[#allocation5 + $0x908] sm:$0xff]  ;;  %v391_v16 = vld [vmem:[#allocation5 + $0x990] sm:$0xff] }
  0x9a   :  { %789 = vmatpush.msrb.mxu0 %v277_v17  ;;  %808 = vmatpush.msrb.mxu1 %v294_v18  ;;  %v341_v17 = vld [vmem:[#allocation5 + $0x800] sm:$0xff]  ;;  %v358_v18 = vld [vmem:[#allocation5 + $0x888] sm:$0xff] }
  0x9b   :  { %829 = vmatpush.msrb.mxu2 %v309_v19  ;;  %848 = vmatpush.msrb.mxu3 %v326_v20  ;;  %v373_v19 = vld [vmem:[#allocation5 + $0x900] sm:$0xff]  ;;  %v390_v20 = vld [vmem:[#allocation5 + $0x988] sm:$0xff] }
  0x9c   :  { %790 = vmatmul.f32.vlgmr.msrb.gmra.mxu0 %v1255_v27  ;;  %830 = vmatmul.f32.vlgmr.msrb.gmra.mxu2 %v1257_v28  ;;  %v403_v27 = vld [vmem:[#allocation5 + $0x9f0] sm:$0xff]  ;;  %v353_v28 = vld [vmem:[#allocation5 + $0x860] sm:$0xff] }
  0x9d   :  { %854 = vmatpush.msra.mxu0 %v356_v21  ;;  %894 = vmatpush.msra.mxu2 %v388_v22  ;;  %v502_v21 = vld.sshfl [vmem:[#allocation1] sm:$0xff pattern:$0x73625140]  ;;  %v504_v22 = vld.sshfl [vmem:[#allocation1 + $0x10] sm:$0xff pattern:$0x73625140] }
  0x9e   :  { %809 = vmatpush.msrb.mxu1 %v293_v23  ;;  %849 = vmatpush.msrb.mxu3 %v325_v24  ;;  %v420_v23 = vld [vmem:[#allocation5 + $0xa78] sm:$0xff] }
  0x9f   :  { %810 = vmatmul.f32.vlgmr.msrb.gmra.mxu1 %v1259_v33  ;;  %850 = vmatmul.f32.vlgmr.msrb.gmra.mxu3 %v1261_v36  ;;  %v369_v33 = vld [vmem:[#allocation5 + $0x8e0] sm:$0xff]  ;;  %v384_v36 = vld [vmem:[#allocation5 + $0x958] sm:$0xff] }
  0xa0   :  { %855 = vmatpush.msra.mxu0 %v355_v25  ;;  %874 = vmatpush.msra.mxu1 %v372_v26  ;;  %v452_v24 = vld [vmem:[#allocation5 + $0xb78] sm:$0xff]  ;;  %v357_v25 = vld [vmem:[#allocation5 + $0x880] sm:$0xff] }
  0xa1   :  { %895 = vmatpush.msra.mxu2 %v387_v30  ;;  %914 = vmatpush.msra.mxu3 %v404_v31  ;;  %v389_v26 = vld [vmem:[#allocation5 + $0x980] sm:$0xff]  ;;  %v503_v30 = vld.sshfl [vmem:[#allocation1 + $0x8] sm:$0xff pattern:$0x73625140] }
  0xa2   :  { %856 = vmatpush.msra.mxu0 %v354_v34  ;;  %875 = vmatpush.msra.mxu1 %v371_v35  ;;  %v505_v31 = vld.sshfl [vmem:[#allocation1 + $0x18] sm:$0xff pattern:$0x73625140]  ;;  %v419_v34 = vld [vmem:[#allocation5 + $0xa70] sm:$0xff] }
  0xa3   :  { %896 = vmatpush.msra.mxu2 %v386_v29  ;;  %915 = vmatpush.msra.mxu3 %v403_v27  ;;  %v436_v35 = vld [vmem:[#allocation5 + $0xaf8] sm:$0xff]  ;;  %v451_v29 = vld [vmem:[#allocation5 + $0xb70] sm:$0xff] }
  0xa4   :  { %857 = vmatpush.msra.mxu0 %v353_v28  ;;  %876 = vmatpush.msra.mxu1 %v370_v32  ;;  %v468_v27 = vld [vmem:[#allocation5 + $0xbf8] sm:$0xff]  ;;  %v418_v28 = vld [vmem:[#allocation5 + $0xa68] sm:$0xff]  ;;  %v435_v32 = vld [vmem:[#allocation5 + $0xaf0] sm:$0xff] }
  0xa5   :  { %897 = vmatpush.msra.mxu2 %v385_v37  ;;  %916 = vmatpush.msra.mxu3 %v402_v38  ;;  %v450_v37 = vld [vmem:[#allocation5 + $0xb68] sm:$0xff]  ;;  %v467_v38 = vld [vmem:[#allocation5 + $0xbf0] sm:$0xff] }
  0xa6   :  { %858 = vmatpush.msra.mxu0 %v352_v39  ;;  %877 = vmatpush.msra.mxu1 %v369_v33  ;;  %v417_v39 = vld [vmem:[#allocation5 + $0xa60] sm:$0xff]  ;;  %v434_v33 = vld [vmem:[#allocation5 + $0xae8] sm:$0xff] }
  0xa7   :  { %898 = vmatpush.msra.mxu2 %v384_v36  ;;  %917 = vmatpush.msra.mxu3 %v401_v40  ;;  %v449_v36 = vld [vmem:[#allocation5 + $0xb60] sm:$0xff]  ;;  %v466_v40 = vld [vmem:[#allocation5 + $0xbe8] sm:$0xff] }
  0xa8   :  { %859 = vmatpush.msra.mxu0 %v351_v41  ;;  %878 = vmatpush.msra.mxu1 %v368_v42  ;;  %v416_v41 = vld [vmem:[#allocation5 + $0xa58] sm:$0xff]  ;;  %v433_v42 = vld [vmem:[#allocation5 + $0xae0] sm:$0xff] }
  0xa9   :  { %899 = vmatpush.msra.mxu2 %v383_v43  ;;  %918 = vmatpush.msra.mxu3 %v400_v44  ;;  %v448_v43 = vld [vmem:[#allocation5 + $0xb58] sm:$0xff]  ;;  %v465_v44 = vld [vmem:[#allocation5 + $0xbe0] sm:$0xff] }
  0xaa   :  { %860 = vmatpush.msra.mxu0 %v350_v45  ;;  %879 = vmatpush.msra.mxu1 %v367_v46  ;;  %v415_v45 = vld [vmem:[#allocation5 + $0xa50] sm:$0xff]  ;;  %v432_v46 = vld [vmem:[#allocation5 + $0xad8] sm:$0xff] }
  0xab   :  { %900 = vmatpush.msra.mxu2 %v382_v47  ;;  %919 = vmatpush.msra.mxu3 %v399_v48  ;;  %v447_v47 = vld [vmem:[#allocation5 + $0xb50] sm:$0xff]  ;;  %v464_v48 = vld [vmem:[#allocation5 + $0xbd8] sm:$0xff] }
  0xac   :  { %861 = vmatpush.msra.mxu0 %v349_v49  ;;  %880 = vmatpush.msra.mxu1 %v366_v50  ;;  %v414_v49 = vld [vmem:[#allocation5 + $0xa48] sm:$0xff]  ;;  %v431_v50 = vld [vmem:[#allocation5 + $0xad0] sm:$0xff] }
  0xad   :  { %901 = vmatpush.msra.mxu2 %v381_v51  ;;  %920 = vmatpush.msra.mxu3 %v398_v52  ;;  %v446_v51 = vld [vmem:[#allocation5 + $0xb48] sm:$0xff]  ;;  %v463_v52 = vld [vmem:[#allocation5 + $0xbd0] sm:$0xff] }
  0xae   :  { %862 = vmatpush.msra.mxu0 %v348_v53  ;;  %881 = vmatpush.msra.mxu1 %v365_v54  ;;  %v413_v53 = vld [vmem:[#allocation5 + $0xa40] sm:$0xff]  ;;  %v430_v54 = vld [vmem:[#allocation5 + $0xac8] sm:$0xff] }
  0xaf   :  { %902 = vmatpush.msra.mxu2 %v380_v55  ;;  %921 = vmatpush.msra.mxu3 %v397_v56  ;;  %v445_v55 = vld [vmem:[#allocation5 + $0xb40] sm:$0xff]  ;;  %v462_v56 = vld [vmem:[#allocation5 + $0xbc8] sm:$0xff] }
  0xb0   :  { %863 = vmatpush.msra.mxu0 %v347_v57  ;;  %882 = vmatpush.msra.mxu1 %v364_v58  ;;  %v412_v57 = vld [vmem:[#allocation5 + $0xa38] sm:$0xff]  ;;  %v429_v58 = vld [vmem:[#allocation5 + $0xac0] sm:$0xff] }
  0xb1   :  { %903 = vmatpush.msra.mxu2 %v379_v59  ;;  %922 = vmatpush.msra.mxu3 %v396_v60  ;;  %v444_v59 = vld [vmem:[#allocation5 + $0xb38] sm:$0xff]  ;;  %v461_v60 = vld [vmem:[#allocation5 + $0xbc0] sm:$0xff] }
  0xb2   :  { %864 = vmatpush.msra.mxu0 %v346_v61  ;;  %883 = vmatpush.msra.mxu1 %v363_v62  ;;  %v411_v61 = vld [vmem:[#allocation5 + $0xa30] sm:$0xff]  ;;  %v428_v62 = vld [vmem:[#allocation5 + $0xab8] sm:$0xff] }
  0xb3   :  { %904 = vmatpush.msra.mxu2 %v378_v63  ;;  %923 = vmatpush.msra.mxu3 %v395_v0  ;;  %v443_v63 = vld [vmem:[#allocation5 + $0xb30] sm:$0xff]  ;;  %v460_v0 = vld [vmem:[#allocation5 + $0xbb8] sm:$0xff] }
  0xb4   :  { %865 = vmatpush.msra.mxu0 %v345_v1  ;;  %884 = vmatpush.msra.mxu1 %v362_v2  ;;  %v410_v1 = vld [vmem:[#allocation5 + $0xa28] sm:$0xff]  ;;  %v427_v2 = vld [vmem:[#allocation5 + $0xab0] sm:$0xff] }
  0xb5   :  { %905 = vmatpush.msra.mxu2 %v377_v3  ;;  %924 = vmatpush.msra.mxu3 %v394_v4  ;;  %v442_v3 = vld [vmem:[#allocation5 + $0xb28] sm:$0xff]  ;;  %v459_v4 = vld [vmem:[#allocation5 + $0xbb0] sm:$0xff] }
  0xb6   :  { %866 = vmatpush.msra.mxu0 %v344_v5  ;;  %885 = vmatpush.msra.mxu1 %v361_v6  ;;  %v409_v5 = vld [vmem:[#allocation5 + $0xa20] sm:$0xff]  ;;  %v426_v6 = vld [vmem:[#allocation5 + $0xaa8] sm:$0xff] }
  0xb7   :  { %906 = vmatpush.msra.mxu2 %v376_v7  ;;  %925 = vmatpush.msra.mxu3 %v393_v8  ;;  %v441_v7 = vld [vmem:[#allocation5 + $0xb20] sm:$0xff]  ;;  %v458_v8 = vld [vmem:[#allocation5 + $0xba8] sm:$0xff] }
  0xb8   :  { %867 = vmatpush.msra.mxu0 %v343_v9  ;;  %886 = vmatpush.msra.mxu1 %v360_v10  ;;  %v408_v9 = vld [vmem:[#allocation5 + $0xa18] sm:$0xff]  ;;  %v425_v10 = vld [vmem:[#allocation5 + $0xaa0] sm:$0xff] }
  0xb9   :  { %907 = vmatpush.msra.mxu2 %v375_v11  ;;  %926 = vmatpush.msra.mxu3 %v392_v12  ;;  %v440_v11 = vld [vmem:[#allocation5 + $0xb18] sm:$0xff]  ;;  %v457_v12 = vld [vmem:[#allocation5 + $0xba0] sm:$0xff] }
  0xba   :  { %868 = vmatpush.msra.mxu0 %v342_v13  ;;  %887 = vmatpush.msra.mxu1 %v359_v14  ;;  %v407_v13 = vld [vmem:[#allocation5 + $0xa10] sm:$0xff]  ;;  %v424_v14 = vld [vmem:[#allocation5 + $0xa98] sm:$0xff] }
  0xbb   :  { %908 = vmatpush.msra.mxu2 %v374_v15  ;;  %927 = vmatpush.msra.mxu3 %v391_v16  ;;  %v439_v15 = vld [vmem:[#allocation5 + $0xb10] sm:$0xff]  ;;  %v456_v16 = vld [vmem:[#allocation5 + $0xb98] sm:$0xff] }
  0xbc   :  { %869 = vmatpush.msra.mxu0 %v341_v17  ;;  %888 = vmatpush.msra.mxu1 %v358_v18  ;;  %v406_v17 = vld [vmem:[#allocation5 + $0xa08] sm:$0xff]  ;;  %v423_v18 = vld [vmem:[#allocation5 + $0xa90] sm:$0xff] }
  0xbd   :  { %909 = vmatpush.msra.mxu2 %v373_v19  ;;  %928 = vmatpush.msra.mxu3 %v390_v20  ;;  %v438_v19 = vld [vmem:[#allocation5 + $0xb08] sm:$0xff]  ;;  %v455_v20 = vld [vmem:[#allocation5 + $0xb90] sm:$0xff] }
  0xbe   :  { %870 = vmatmul.f32.vlgmr.msra.gmra.mxu0 %v502_v21  ;;  %910 = vmatmul.f32.vlgmr.msra.gmra.mxu2 %v504_v22  ;;  %v405_v21 = vld [vmem:[#allocation5 + $0xa00] sm:$0xff]  ;;  %v422_v22 = vld [vmem:[#allocation5 + $0xa88] sm:$0xff] }
  0xbf   :  { %934 = vmatpush.msrb.mxu0 %v420_v23  ;;  %974 = vmatpush.msrb.mxu2 %v452_v24  ;;  %v437_v23 = vld [vmem:[#allocation5 + $0xb00] sm:$0xff]  ;;  %v454_v24 = vld [vmem:[#allocation5 + $0xb88] sm:$0xff] }
  0xc0   :  { %889 = vmatpush.msra.mxu1 %v357_v25  ;;  %929 = vmatpush.msra.mxu3 %v389_v26  ;;  %v506_v25 = vld.sshfl [vmem:[#allocation1 + $0x20] sm:$0xff pattern:$0x73625140]  ;;  %v508_v26 = vld.sshfl [vmem:[#allocation1 + $0x30] sm:$0xff pattern:$0x73625140] }
  0xc1   :  { %890 = vmatmul.f32.vlgmr.msra.gmra.mxu1 %v503_v30  ;;  %930 = vmatmul.f32.vlgmr.msra.gmra.mxu3 %v505_v31  ;;  %v421_v30 = vld [vmem:[#allocation5 + $0xa80] sm:$0xff] }
  0xc2   :  { %935 = vmatpush.msrb.mxu0 %v419_v34  ;;  %954 = vmatpush.msrb.mxu1 %v436_v35  ;;  %v453_v31 = vld [vmem:[#allocation5 + $0xb80] sm:$0xff]  ;;  %v507_v34 = vld.sshfl [vmem:[#allocation1 + $0x28] sm:$0xff pattern:$0x73625140] }
  0xc3   :  { %975 = vmatpush.msrb.mxu2 %v451_v29  ;;  %994 = vmatpush.msrb.mxu3 %v468_v27  ;;  %v509_v35 = vld.sshfl [vmem:[#allocation1 + $0x38] sm:$0xff pattern:$0x73625140] }
  0xc4   :  { %936 = vmatpush.msrb.mxu0 %v418_v28  ;;  %955 = vmatpush.msrb.mxu1 %v435_v32  ;;  %v1065_v29 = vld [vmem:[#allocation7] ss:$0 sm:$0xff] }
  0xc5   :  { %976 = vmatpush.msrb.mxu2 %v450_v37  ;;  %995 = vmatpush.msrb.mxu3 %v467_v38 }
  0xc6   :  { %937 = vmatpush.msrb.mxu0 %v417_v39  ;;  %956 = vmatpush.msrb.mxu1 %v434_v33 }
  0xc7   :  { %977 = vmatpush.msrb.mxu2 %v449_v36  ;;  %996 = vmatpush.msrb.mxu3 %v466_v40 }
  0xc8   :  { %938 = vmatpush.msrb.mxu0 %v416_v41  ;;  %957 = vmatpush.msrb.mxu1 %v433_v42 }
  0xc9   :  { %978 = vmatpush.msrb.mxu2 %v448_v43  ;;  %997 = vmatpush.msrb.mxu3 %v465_v44 }
  0xca   :  { %939 = vmatpush.msrb.mxu0 %v415_v45  ;;  %958 = vmatpush.msrb.mxu1 %v432_v46 }
  0xcb   :  { %979 = vmatpush.msrb.mxu2 %v447_v47  ;;  %998 = vmatpush.msrb.mxu3 %v464_v48 }
  0xcc   :  { %940 = vmatpush.msrb.mxu0 %v414_v49  ;;  %959 = vmatpush.msrb.mxu1 %v431_v50 }
  0xcd   :  { %980 = vmatpush.msrb.mxu2 %v446_v51  ;;  %999 = vmatpush.msrb.mxu3 %v463_v52 }
  0xce   :  { %941 = vmatpush.msrb.mxu0 %v413_v53  ;;  %960 = vmatpush.msrb.mxu1 %v430_v54 }
  0xcf   :  { %981 = vmatpush.msrb.mxu2 %v445_v55  ;;  %1000 = vmatpush.msrb.mxu3 %v462_v56 }
  0xd0   :  { %942 = vmatpush.msrb.mxu0 %v412_v57  ;;  %961 = vmatpush.msrb.mxu1 %v429_v58 }
  0xd1   :  { %982 = vmatpush.msrb.mxu2 %v444_v59  ;;  %1001 = vmatpush.msrb.mxu3 %v461_v60 }
  0xd2   :  { %943 = vmatpush.msrb.mxu0 %v411_v61  ;;  %962 = vmatpush.msrb.mxu1 %v428_v62 }
  0xd3   :  { %983 = vmatpush.msrb.mxu2 %v443_v63  ;;  %1002 = vmatpush.msrb.mxu3 %v460_v0  ;;  %v551_v27 = vpop.f32.mrf.mxu0 }
  0xd4   :  { %944 = vmatpush.msrb.mxu0 %v410_v1  ;;  %963 = vmatpush.msrb.mxu1 %v427_v2  ;;  %v552_v28 = vadd.f32 %v1065_v29, %v551_v27 }
  0xd5   :  { %984 = vmatpush.msrb.mxu2 %v442_v3  ;;  %1003 = vmatpush.msrb.mxu3 %v459_v4 }
  0xd6   :  { %945 = vmatpush.msrb.mxu0 %v409_v5  ;;  %964 = vmatpush.msrb.mxu1 %v426_v6  ;;  %v571_v32 = vpop.f32.mrf.mxu1 }
  0xd7   :  { %985 = vmatpush.msrb.mxu2 %v441_v7  ;;  %1004 = vmatpush.msrb.mxu3 %v458_v8  ;;  %v572_v37 = vadd.f32 %v571_v32, %v552_v28 }
  0xd8   :  { %946 = vmatpush.msrb.mxu0 %v408_v9  ;;  %965 = vmatpush.msrb.mxu1 %v425_v10 }
  0xd9   :  { %986 = vmatpush.msrb.mxu2 %v440_v11  ;;  %1005 = vmatpush.msrb.mxu3 %v457_v12  ;;  %v591_v38 = vpop.f32.mrf.mxu2 }
  0xda   :  { %947 = vmatpush.msrb.mxu0 %v407_v13  ;;  %966 = vmatpush.msrb.mxu1 %v424_v14  ;;  %v592_v39 = vadd.f32 %v591_v38, %v572_v37 }
  0xdb   :  { %987 = vmatpush.msrb.mxu2 %v439_v15  ;;  %1006 = vmatpush.msrb.mxu3 %v456_v16 }
  0xdc   :  { %948 = vmatpush.msrb.mxu0 %v406_v17  ;;  %967 = vmatpush.msrb.mxu1 %v423_v18  ;;  %v611_v33 = vpop.f32.mrf.mxu3  ;;  %v1066_v17 = vld [vmem:[#allocation8] ss:$0 sm:$0xff] }
  0xdd   :  { %988 = vmatpush.msrb.mxu2 %v438_v19  ;;  %1007 = vmatpush.msrb.mxu3 %v455_v20  ;;  %v612_v36 = vadd.f32 %v611_v33, %v592_v39 }
  0xde   :  { %949 = vmatpush.msrb.mxu0 %v405_v21  ;;  %968 = vmatpush.msrb.mxu1 %v422_v22  ;;  %v1067_v21 = vld [vmem:[#allocation2] ss:$0 sm:$0xff] }
  0xdf   :  { %989 = vmatpush.msrb.mxu2 %v437_v23  ;;  %1008 = vmatpush.msrb.mxu3 %v454_v24  ;;  %v631_v40 = vpop.f32.mrf.mxu0 }
  0xe0   :  { %950 = vmatmul.f32.vlgmr.msrb.gmra.mxu0 %v506_v25  ;;  %990 = vmatmul.f32.vlgmr.msrb.gmra.mxu2 %v508_v26  ;;  %v632_v41 = vadd.f32 %v631_v40, %v612_v36 }
  0xe1   :  { %969 = vmatpush.msrb.mxu1 %v421_v30  ;;  %1009 = vmatpush.msrb.mxu3 %v453_v31 }
  0xe2   :  { %970 = vmatmul.f32.vlgmr.msrb.gmra.mxu1 %v507_v34  ;;  %1010 = vmatmul.f32.vlgmr.msrb.gmra.mxu3 %v509_v35  ;;  %v651_v42 = vpop.f32.mrf.mxu1 }
  0xe3   :  { %v652_v43 = vadd.f32 %v651_v42, %v632_v41  ;;  %v671_v44 = vpop.f32.mrf.mxu2 }
  0xe5   :  { %v672_v45 = vadd.f32 %v671_v44, %v652_v43 }
  0xe6   :  { %v691_v46 = vpop.f32.mrf.mxu3 }
  0xe7   :  { %v692_v48 = vadd.f32 %v691_v46, %v672_v45 }
  0xf7   :  { %v711_v47 = vpop.f32.mrf.mxu0 }
  0xf8   :  { %v712_v49 = vadd.f32 %v711_v47, %v692_v48 }
  0xfa   :  { %v731_v50 = vpop.f32.mrf.mxu1 }
  0xfb   :  { %v732_v52 = vadd.f32 %v731_v50, %v712_v49 }
  0xfd   :  { %v751_v51 = vpop.f32.mrf.mxu2 }
  0xfe   :  { %v752_v53 = vadd.f32 %v751_v51, %v732_v52 }
 0x100   :  { %v771_v54 = vpop.f32.mrf.mxu3 }
 0x101   :  { %v772_v56 = vadd.f32 %v771_v54, %v752_v53 }
 0x119   :  { %v791_v55 = vpop.f32.mrf.mxu0 }
 0x11a   :  { %v792_v57 = vadd.f32 %v791_v55, %v772_v56 }
 0x11c   :  { %v811_v58 = vpop.f32.mrf.mxu1 }
 0x11d   :  { %v812_v60 = vadd.f32 %v811_v58, %v792_v57 }
 0x11f   :  { %v831_v59 = vpop.f32.mrf.mxu2 }
 0x120   :  { %v832_v61 = vadd.f32 %v831_v59, %v812_v60 }
 0x122   :  { %v851_v62 = vpop.f32.mrf.mxu3 }
 0x123   :  { %v852_v0 = vadd.f32 %v851_v62, %v832_v61 }
 0x13b   :  { %v871_v63 = vpop.f32.mrf.mxu0 }
 0x13c   :  { %v872_v1 = vadd.f32 %v871_v63, %v852_v0 }
 0x13e   :  { %v891_v2 = vpop.f32.mrf.mxu1 }
 0x13f   :  { %v892_v4 = vadd.f32 %v891_v2, %v872_v1 }
 0x141   :  { %v911_v3 = vpop.f32.mrf.mxu2 }
 0x142   :  { %v912_v5 = vadd.f32 %v911_v3, %v892_v4 }
 0x144   :  { %v931_v6 = vpop.f32.mrf.mxu3 }
 0x145   :  { %v932_v7 = vadd.f32 %v931_v6, %v912_v5 }
 0x15d   :  { %v951_v8 = vpop.f32.mrf.mxu0 }
 0x15e   :  { %v952_v9 = vadd.f32 %v951_v8, %v932_v7 }
 0x15f   :  { %v971_v10 = vpop.f32.mrf.mxu1 }
 0x160   :  { %v972_v11 = vadd.f32 %v971_v10, %v952_v9 }
 0x163   :  { %v991_v12 = vpop.f32.mrf.mxu2 }
 0x164   :  { %v992_v13 = vadd.f32 %v991_v12, %v972_v11 }
 0x165   :  { %v1011_v14 = vpop.f32.mrf.mxu3 }
 0x166   :  { %v1012_v15 = vadd.f32 %v1011_v14, %v992_v13 }
 0x168   :  { %v1014_v16 = vmul.f32 0.2, %v1012_v15 }
 0x16a   :  { %v1015_v18 = vmax.f32 %v1012_v15, %v1014_v16 }
 0x16c   :  { %v1020_v19 = vmul.f32 %v1066_v17, %v1015_v18 }
 0x16e   :  { %v1022_v20 = vsel %vm1021_vm0, %v1020_v19, 0.0 }
 0x16f   :  { %1023 = vadd.xlane.f32.xlu0 %v1022_v20 }
 0x1e2   :  { %v1024_v22 = vpop.xlane.xlu0 %1023 }
 0x1e3   :  { %v1029_v23 = vadd.f32 %v1067_v21, %v1024_v22 }
 0x1e5   :  { %v1058_v24 = vmul.f32 -1.442695, %v1029_v23 }
 0x1e7   :  { %1068 = vpow2.f32 %v1058_v24 }
 0x1ed   :  { %v1069_v25 = vpop.eup %1068 }
 0x1ee   :  { %v1033_v26 = vadd.f32 1.0, %v1069_v25 }
 0x1f0   :  { %1070 = vrcp.f32 %v1033_v26  ;;  %v1045_v35 = vand.u32 2147483648, %v1033_v26  ;;  %v1043_v27 = vand.u32 2147483647, %v1033_v26  ;;  %vm1039_vm2 = vweird.f32 %v1033_v26 }
 0x1f2   :  { %v1046_v32 = vor.u32 1.1754944e-38, %v1045_v35  ;;  %vm1044_vm5 = vcmp.eq.f32.partialorder %v1043_v27, 8.507059e+37 }
 0x1f6   :  { %v1071_v30 = vpop.eup %1070 }
 0x1f7   :  { %v1035_v31 = vmul.f32 %v1071_v30, %v1033_v26  ;;  %vm1040_vm1 = vweird.f32 %v1071_v30 }
 0x1f8   :  { %vm1041_vm3 = vmor %vm1039_vm2, %vm1040_vm1 }
 0x1f9   :  { %v1036_v34 = vsub.f32 1.0, %v1035_v31 }
 0x1fb   :  { %v1037_v29 = vmul.f32 %v1071_v30, %v1036_v34 }
 0x1fd   :  { %v1038_v28 = vadd.f32 %v1071_v30, %v1037_v29 }
 0x1ff   :  { %v1042_v37 = vsel %vm1041_vm3, %v1071_v30, %v1038_v28 }
 0x200   :  { %v1047_v38 = vsel %vm1044_vm5, %v1046_v32, %v1042_v37 }
 0x201   :  { %1050 = vst.msk [vmem:[%s1275_s5] sm:$0x3] %vm1049_vm4, %v1047_v38 }
 0x202   :  { %1055 = vsyncpa [#allocation4], 1 }
 0x203   :  { %1056 = vsyncpa [#allocation6], 1 }
 0x204   :  { %1057 = vsyncpa [#allocation9], 1 }

</bundles_post_ra>
